<compile_context>
chip_gen: v7x
topology: tpu7x:2x2x1
jax: 0.10.0
libtpu: 0.0.40
codegen_flags: <defaults>
</compile_context>

<pallas_src>
import jax
import jax.numpy as jnp
from jax.experimental import pallas as pl
from jax.experimental.pallas import tpu as pltpu


def _round_up(x, m):
    return (x + m - 1) // m * m


def _fused_embed_kernel(idx_ref, mask_ref, table_ref, emb_ref, rep_ref):
    """Batched embedding gather + masked word-sum for one row-group tile.

    idx_ref  : (tile_n, W)    int32 token ids (row-group n, word w)
    mask_ref : (tile_n, W)    f32 word mask (zero rows for the answers slice)
    table_ref: (V, Dp)        f32 embedding table, Dp lane-padded to x128
    emb_ref  : (tile_n*W, Dp) per-word embeddings, row order n*W + w
    rep_ref  : (tile_n, Dp)   sum_w mask[n, w] * table[idx[n, w]]
    """
    idx = idx_ref[...]
    mask = mask_ref[...]
    table = table_ref[...]
    tn, w = idx.shape
    v, dp = table.shape

    # One-hot gather on the MXU: a single (tile_n*W, V) @ (V, Dp) matmul per
    # tile.  Row order n*W + w makes the later (tn, W, Dp) view a free reshape.
    # 0/1 in f32 are exact, so this equals the exact embedding gather.
    iota_v = jax.lax.broadcasted_iota(jnp.int32, (tn, w, v), 2)
    onehot = (idx[:, :, None] == iota_v).astype(jnp.float32).reshape(tn * w, v)
    emb = jnp.dot(onehot, table, preferred_element_type=jnp.float32)  # (tn*W, Dp)
    emb_ref[...] = emb

    # Masked sum over words: W unrolled lane-dense VPU FMAs (keeps the
    # reduction off the XLU tree; Dp=128 lanes are fully utilized).
    emb3 = emb.reshape(tn, w, dp)
    rep = emb3[:, 0, :] * mask[:, 0][:, None]
    for wi in range(1, w):
        rep = rep + emb3[:, wi, :] * mask[:, wi][:, None]
    rep_ref[...] = rep


def fused_embed(idx, mask, table_p, *, target_m=256):
    """Fused gather + masked word-sum.

    idx, mask: (N, W).  table_p: (V, Dp) with Dp a multiple of 128.
    Returns emb (N, W, Dp) and rep (N, Dp).
    """
    n, w = idx.shape
    v, dp = table_p.shape
    assert dp % 128 == 0

    # Group tile: aim for ~target_m matmul rows (saturates the 256-wide MXU on
    # v6e/v7x; 2 x 128 waves on v5e), but never pad past the actual group count
    # rounded to the 8-sublane granule (padding waste dominates at small sizes).
    max_tile_n = max(8, _round_up(max(1, target_m // w), 8))
    n8 = _round_up(n, 8)
    tile_n = n8 if n8 <= max_tile_n else max_tile_n
    n_pad = _round_up(n, tile_n)

    idx_p = jnp.zeros((n_pad, w), jnp.int32).at[:n].set(idx.astype(jnp.int32))
    mask_p = jnp.zeros((n_pad, w), jnp.float32).at[:n].set(mask.astype(jnp.float32))

    # Explicit VMEM budget: resident table + double-buffered per-tile inputs /
    # outputs + the (tile_n*W, V) one-hot operand, with headroom.  Clamped so
    # it is safe on v5e (16 MiB scoped default) and v7x (64 MiB physical).
    est = (2 * v * dp * 4
           + 3 * (2 * tile_n * w * 4            # idx + mask tiles
                  + tile_n * w * dp * 4         # emb tile
                  + tile_n * dp * 4             # rep tile
                  + tile_n * w * v * 4))        # one-hot operand
    vmem_limit = int(min(64 * 1024 * 1024, max(16 * 1024 * 1024, est)))

    emb, rep = pl.pallas_call(
        _fused_embed_kernel,
        out_shape=(jax.ShapeDtypeStruct((n_pad * w, dp), jnp.float32),
                   jax.ShapeDtypeStruct((n_pad, dp), jnp.float32)),
        grid=(n_pad // tile_n,),
        in_specs=[pl.BlockSpec((tile_n, w), lambda i: (i, 0)),
                  pl.BlockSpec((tile_n, w), lambda i: (i, 0)),
                  pl.BlockSpec((v, dp), lambda i: (0, 0))],   # table VMEM-resident
        out_specs=(pl.BlockSpec((tile_n * w, dp), lambda i: (i, 0)),
                   pl.BlockSpec((tile_n, dp), lambda i: (i, 0))),
        compiler_params=pltpu.CompilerParams(
            dimension_semantics=("parallel",),
            vmem_limit_bytes=vmem_limit),
    )(idx_p, mask_p, table_p)

    return emb.reshape(n_pad, w, dp)[:n], rep[:n]


def image_text_network_forward(params, inputs):
    (in_context_fc7, in_context_bb, in_bb_mask, in_context, in_c_mask,
     in_answer_fc7, in_answer_bb, in_answers, in_a_mask) = inputs
    table = params["l_context_answers_emb"]            # (vocab_len, d_word)
    v, d = table.shape

    in_context = in_context.astype(jnp.int32)          # mirrors in_context.long()
    assert in_context_fc7.ndim == 4
    context_length = in_context_fc7.shape[1]            # noqa: F841 (mirrors torch code)

    b, c, x, w = in_context.shape
    ba, a, wa = in_answers.shape
    n_ans = ba * a
    n_ctx = b * c * x
    w_max = max(w, wa)

    # Lane-dense table: pad D -> multiple of 128 once (unmasked stores + full
    # MXU result columns); the extra columns are zeros and sliced off below.
    dp = _round_up(d, 128)
    table_p = table if dp == d else jnp.pad(table, ((0, 0), (0, dp - d)))

    # Fuse answers + context lookups into ONE kernel launch: concatenate row
    # groups; answer rows carry a zero mask (their rep output is discarded).
    idx_all = jnp.zeros((n_ans + n_ctx, w_max), jnp.int32)
    idx_all = idx_all.at[:n_ans, :wa].set(in_answers.astype(jnp.int32).reshape(n_ans, wa))
    idx_all = idx_all.at[n_ans:, :w].set(in_context.reshape(n_ctx, w))
    mask_all = jnp.zeros((n_ans + n_ctx, w_max), jnp.float32)
    mask_all = mask_all.at[n_ans:, :w].set(in_c_mask.astype(jnp.float32).reshape(n_ctx, w))

    emb_all, rep_all = fused_embed(idx_all, mask_all, table_p)

    # answers_emb = self.l_context_answers_emb(in_answers)
    answers_emb = emb_all[:n_ans, :wa, :d].reshape(ba, a, wa, d)
    # context_emb = self.l_context_answers_emb(in_context)
    context_emb = emb_all[n_ans:, :w, :d].reshape(b, c, x, w, d)
    # context_box_rep = torch.sum(context_emb * in_c_mask[..., None], dim=3)
    context_box_rep = rep_all[n_ans:, :d].reshape(b, c, x, d)

    # TODO(synk): the torch forward returns None and contains an unreachable/buggy
    # `assert c_mask.shape() == in_context.shape()`; we return the computed tensors.
    return answers_emb, context_emb, context_box_rep


if __name__ == "__main__":
    vocab_len, d_word, d_hidden = 64, 32, 64   # d_hidden unused by this forward
    B, C, X, W = 2, 3, 3, 8                    # batch, context panels, boxes, words
    A, Wa = 3, 8                               # answer candidates, answer words

    key = jax.random.PRNGKey(0)
    keys = jax.random.split(key, 8)
    params = {
        "l_context_answers_emb":
            (jax.random.normal(keys[0], (vocab_len, d_word), jnp.float32) * 0.1)
    }

    in_context_fc7 = jax.random.normal(keys[1], (B, C, X, 16), jnp.float32)   # 4-D, as asserted
    in_context_bb = jax.random.normal(keys[2], (B, C, X, 4), jnp.float32)
    in_bb_mask = jnp.ones((B, C, X), jnp.float32)
    in_context = jax.random.randint(keys[3], (B, C, X, W), 0, vocab_len).astype(jnp.int32)
    in_c_mask = (jax.random.uniform(keys[4], (B, C, X, W)) > 0.3).astype(jnp.float32)
    in_answer_fc7 = jax.random.normal(keys[5], (B, A, 16), jnp.float32)
    in_answer_bb = jax.random.normal(keys[6], (B, A, 4), jnp.float32)
    in_answers = jax.random.randint(keys[7], (B, A, Wa), 0, vocab_len).astype(jnp.int32)
    in_a_mask = jnp.ones((B, A, Wa), jnp.float32)

    inputs = (in_context_fc7, in_context_bb, in_bb_mask, in_context, in_c_mask,
              in_answer_fc7, in_answer_bb, in_answers, in_a_mask)

    answers_emb, context_emb, context_box_rep = jax.block_until_ready(
        image_text_network_forward(params, inputs))

    # Pure-JAX reference check (gather semantics of nn.Embedding).
    table = params["l_context_answers_emb"]
    ref_answers_emb = table[in_answers]
    ref_context_emb = table[in_context]
    ref_context_box_rep = jnp.sum(ref_context_emb * in_c_mask[..., None], axis=3)
    assert jnp.allclose(answers_emb, ref_answers_emb, atol=1e-5)
    assert jnp.allclose(context_emb, ref_context_emb, atol=1e-5)
    assert jnp.allclose(context_box_rep, ref_context_box_rep, atol=1e-5)

    print("KERNEL_OK")
</pallas_src>

<mosaic_0001>
module attributes {stable_mosaic.version = 11 : i64} {
  func.func @_fused_embed_kernel(%arg0: i32, %arg1: memref<24x8xi32, #tpu.memory_space<vmem>>, %arg2: memref<24x8xf32, #tpu.memory_space<vmem>>, %arg3: memref<64x128xf32, #tpu.memory_space<vmem>>, %arg4: memref<192x128xf32, #tpu.memory_space<vmem>>, %arg5: memref<24x128xf32, #tpu.memory_space<vmem>>) attributes {dimension_semantics = [#tpu.dimension_semantics<parallel>], iteration_bounds = array<i64: 1>, scalar_prefetch = 0 : i64, scratch_operands = 0 : i64, tpu.core_type = #tpu.core_type<tc>, window_params = [{transform_indices = @transform_0, window_bounds = array<i64: 24, 8>}, {transform_indices = @transform_1, window_bounds = array<i64: 24, 8>}, {pipeline_mode = #tpu.pipeline_mode<synchronous>, transform_indices = @transform_2, window_bounds = array<i64: 64, 128>}, {transform_indices = @transform_3, window_bounds = array<i64: 192, 128>}, {transform_indices = @transform_4, window_bounds = array<i64: 24, 128>}]} {
    %c0 = arith.constant 0 : index
    %c0_0 = arith.constant 0 : index
    %0 = vector.load %arg1[%c0, %c0_0] : memref<24x8xi32, #tpu.memory_space<vmem>>, vector<24x8xi32>
    %c0_1 = arith.constant 0 : index
    %c0_2 = arith.constant 0 : index
    %1 = vector.load %arg2[%c0_1, %c0_2] : memref<24x8xf32, #tpu.memory_space<vmem>>, vector<24x8xf32>
    %c0_3 = arith.constant 0 : index
    %c0_4 = arith.constant 0 : index
    %2 = vector.load %arg3[%c0_3, %c0_4] : memref<64x128xf32, #tpu.memory_space<vmem>>, vector<64x128xf32>
    %3 = tpu.iota {dimensions = array<i32: 2>} : vector<24x8x64xi32>
    %4 = vector.shape_cast %0 : vector<24x8xi32> to vector<24x8x1xi32>
    %5 = vector.broadcast %4 : vector<24x8x1xi32> to vector<24x8x64xi32>
    %6 = arith.cmpi eq, %5, %3 : vector<24x8x64xi32>
    %7 = arith.extui %6 : vector<24x8x64xi1> to vector<24x8x64xi32>
    %8 = arith.sitofp %7 : vector<24x8x64xi32> to vector<24x8x64xf32>
    %9 = vector.shape_cast %8 : vector<24x8x64xf32> to vector<192x64xf32>
    %cst = arith.constant dense<0.000000e+00> : vector<192x128xf32>
    %10 = tpu.matmul %9, %2, %cst {dimension_numbers = #tpu.dot_dimension_numbers<[1], [0], [0], [1], [0, 0, 1, 1], [], []>} : vector<192x64xf32>, vector<64x128xf32>, vector<192x128xf32> -> vector<192x128xf32>
    %c0_5 = arith.constant 0 : index
    %c0_6 = arith.constant 0 : index
    %11 = vector.load %arg4[%c0_5, %c0_6] : memref<192x128xf32, #tpu.memory_space<vmem>>, vector<192x128xf32>
    tpu.vector_store %arg4[%c0_5, %c0_6], %10 {strides = array<i32>} : memref<192x128xf32, #tpu.memory_space<vmem>>, vector<192x128xf32>,
    %12 = vector.shape_cast %10 : vector<192x128xf32> to vector<24x8x128xf32>
    %13 = vector.extract_strided_slice %12 {offsets = [0, 0, 0], sizes = [24, 1, 128], strides = [1, 1, 1]} : vector<24x8x128xf32> to vector<24x1x128xf32>
    %14 = vector.shape_cast %13 : vector<24x1x128xf32> to vector<24x128xf32>
    %15 = vector.extract_strided_slice %1 {offsets = [0, 0], sizes = [24, 1], strides = [1, 1]} : vector<24x8xf32> to vector<24x1xf32>
    %16 = vector.shape_cast %15 : vector<24x1xf32> to vector<24xf32>
    %17 = vector.shape_cast %16 : vector<24xf32> to vector<24x1xf32>
    %18 = vector.broadcast %17 : vector<24x1xf32> to vector<24x128xf32>
    %19 = arith.mulf %14, %18 : vector<24x128xf32>
    %20 = vector.extract_strided_slice %12 {offsets = [0, 1, 0], sizes = [24, 1, 128], strides = [1, 1, 1]} : vector<24x8x128xf32> to vector<24x1x128xf32>
    %21 = vector.shape_cast %20 : vector<24x1x128xf32> to vector<24x128xf32>
    %22 = vector.extract_strided_slice %1 {offsets = [0, 1], sizes = [24, 1], strides = [1, 1]} : vector<24x8xf32> to vector<24x1xf32>
    %23 = vector.shape_cast %22 : vector<24x1xf32> to vector<24xf32>
    %24 = vector.shape_cast %23 : vector<24xf32> to vector<24x1xf32>
    %25 = vector.broadcast %24 : vector<24x1xf32> to vector<24x128xf32>
    %26 = arith.mulf %21, %25 : vector<24x128xf32>
    %27 = arith.addf %19, %26 : vector<24x128xf32>
    %28 = vector.extract_strided_slice %12 {offsets = [0, 2, 0], sizes = [24, 1, 128], strides = [1, 1, 1]} : vector<24x8x128xf32> to vector<24x1x128xf32>
    %29 = vector.shape_cast %28 : vector<24x1x128xf32> to vector<24x128xf32>
    %30 = vector.extract_strided_slice %1 {offsets = [0, 2], sizes = [24, 1], strides = [1, 1]} : vector<24x8xf32> to vector<24x1xf32>
    %31 = vector.shape_cast %30 : vector<24x1xf32> to vector<24xf32>
    %32 = vector.shape_cast %31 : vector<24xf32> to vector<24x1xf32>
    %33 = vector.broadcast %32 : vector<24x1xf32> to vector<24x128xf32>
    %34 = arith.mulf %29, %33 : vector<24x128xf32>
    %35 = arith.addf %27, %34 : vector<24x128xf32>
    %36 = vector.extract_strided_slice %12 {offsets = [0, 3, 0], sizes = [24, 1, 128], strides = [1, 1, 1]} : vector<24x8x128xf32> to vector<24x1x128xf32>
    %37 = vector.shape_cast %36 : vector<24x1x128xf32> to vector<24x128xf32>
    %38 = vector.extract_strided_slice %1 {offsets = [0, 3], sizes = [24, 1], strides = [1, 1]} : vector<24x8xf32> to vector<24x1xf32>
    %39 = vector.shape_cast %38 : vector<24x1xf32> to vector<24xf32>
    %40 = vector.shape_cast %39 : vector<24xf32> to vector<24x1xf32>
    %41 = vector.broadcast %40 : vector<24x1xf32> to vector<24x128xf32>
    %42 = arith.mulf %37, %41 : vector<24x128xf32>
    %43 = arith.addf %35, %42 : vector<24x128xf32>
    %44 = vector.extract_strided_slice %12 {offsets = [0, 4, 0], sizes = [24, 1, 128], strides = [1, 1, 1]} : vector<24x8x128xf32> to vector<24x1x128xf32>
    %45 = vector.shape_cast %44 : vector<24x1x128xf32> to vector<24x128xf32>
    %46 = vector.extract_strided_slice %1 {offsets = [0, 4], sizes = [24, 1], strides = [1, 1]} : vector<24x8xf32> to vector<24x1xf32>
    %47 = vector.shape_cast %46 : vector<24x1xf32> to vector<24xf32>
    %48 = vector.shape_cast %47 : vector<24xf32> to vector<24x1xf32>
    %49 = vector.broadcast %48 : vector<24x1xf32> to vector<24x128xf32>
    %50 = arith.mulf %45, %49 : vector<24x128xf32>
    %51 = arith.addf %43, %50 : vector<24x128xf32>
    %52 = vector.extract_strided_slice %12 {offsets = [0, 5, 0], sizes = [24, 1, 128], strides = [1, 1, 1]} : vector<24x8x128xf32> to vector<24x1x128xf32>
    %53 = vector.shape_cast %52 : vector<24x1x128xf32> to vector<24x128xf32>
    %54 = vector.extract_strided_slice %1 {offsets = [0, 5], sizes = [24, 1], strides = [1, 1]} : vector<24x8xf32> to vector<24x1xf32>
    %55 = vector.shape_cast %54 : vector<24x1xf32> to vector<24xf32>
    %56 = vector.shape_cast %55 : vector<24xf32> to vector<24x1xf32>
    %57 = vector.broadcast %56 : vector<24x1xf32> to vector<24x128xf32>
    %58 = arith.mulf %53, %57 : vector<24x128xf32>
    %59 = arith.addf %51, %58 : vector<24x128xf32>
    %60 = vector.extract_strided_slice %12 {offsets = [0, 6, 0], sizes = [24, 1, 128], strides = [1, 1, 1]} : vector<24x8x128xf32> to vector<24x1x128xf32>
    %61 = vector.shape_cast %60 : vector<24x1x128xf32> to vector<24x128xf32>
    %62 = vector.extract_strided_slice %1 {offsets = [0, 6], sizes = [24, 1], strides = [1, 1]} : vector<24x8xf32> to vector<24x1xf32>
    %63 = vector.shape_cast %62 : vector<24x1xf32> to vector<24xf32>
    %64 = vector.shape_cast %63 : vector<24xf32> to vector<24x1xf32>
    %65 = vector.broadcast %64 : vector<24x1xf32> to vector<24x128xf32>
    %66 = arith.mulf %61, %65 : vector<24x128xf32>
    %67 = arith.addf %59, %66 : vector<24x128xf32>
    %68 = vector.extract_strided_slice %12 {offsets = [0, 7, 0], sizes = [24, 1, 128], strides = [1, 1, 1]} : vector<24x8x128xf32> to vector<24x1x128xf32>
    %69 = vector.shape_cast %68 : vector<24x1x128xf32> to vector<24x128xf32>
    %70 = vector.extract_strided_slice %1 {offsets = [0, 7], sizes = [24, 1], strides = [1, 1]} : vector<24x8xf32> to vector<24x1xf32>
    %71 = vector.shape_cast %70 : vector<24x1xf32> to vector<24xf32>
    %72 = vector.shape_cast %71 : vector<24xf32> to vector<24x1xf32>
    %73 = vector.broadcast %72 : vector<24x1xf32> to vector<24x128xf32>
    %74 = arith.mulf %69, %73 : vector<24x128xf32>
    %75 = arith.addf %67, %74 : vector<24x128xf32>
    %c0_7 = arith.constant 0 : index
    %c0_8 = arith.constant 0 : index
    %76 = vector.load %arg5[%c0_7, %c0_8] : memref<24x128xf32, #tpu.memory_space<vmem>>, vector<24x128xf32>
    tpu.vector_store %arg5[%c0_7, %c0_8], %75 {strides = array<i32>} : memref<24x128xf32, #tpu.memory_space<vmem>>, vector<24x128xf32>,
    return
  }
  func.func @transform_0(%arg0: i32) -> (i32, i32) {
    %c0_i32 = arith.constant 0 : i32
    %c0_i32_0 = arith.constant 0 : i32
    return %arg0, %c0_i32 : i32, i32
  }
  func.func @transform_1(%arg0: i32) -> (i32, i32) {
    %c0_i32 = arith.constant 0 : i32
    %c0_i32_0 = arith.constant 0 : i32
    return %arg0, %c0_i32 : i32, i32
  }
  func.func @transform_2(%arg0: i32) -> (i32, i32) {
    %c0_i32 = arith.constant 0 : i32
    %c0_i32_0 = arith.constant 0 : i32
    %c0_i32_1 = arith.constant 0 : i32
    return %c0_i32, %c0_i32_0 : i32, i32
  }
  func.func @transform_3(%arg0: i32) -> (i32, i32) {
    %c0_i32 = arith.constant 0 : i32
    %c0_i32_0 = arith.constant 0 : i32
    return %arg0, %c0_i32 : i32, i32
  }
  func.func @transform_4(%arg0: i32) -> (i32, i32) {
    %c0_i32 = arith.constant 0 : i32
    %c0_i32_0 = arith.constant 0 : i32
    return %arg0, %c0_i32 : i32, i32
  }
}

</mosaic_0001>

<bundles_post_ra>
// kernel: tpu_custom_call.1
= control target key start
LH: loop header
LB: loop body
LE: loop exit
PB: predicated region body
PF: predicated region fallthrough
CT: control target
= control target key end

     0   :  { %10 = vsyncpa [#allocation3], 0  ;;  %v32_v0 = vlaneseq  ;;  %s3479_s0 = inlined_call_operand.vmem [shape: s32[24,8], index: 0, kind: input, shape index: {}]   ;;  %s3480_s1 = inlined_call_operand.vmem [shape: f32[24,8], index: 1, kind: input, shape index: {}]   ;;  %s3481_s2 = inlined_call_operand.vmem [shape: f32[64,128], index: 2, kind: input, shape index: {}]   ;;  %s3482_s3 = inlined_call_operand.hbm [shape: f32[192,128], index: 3, kind: output, shape index: {0}]   ;;  %s3483_s4 = inlined_call_operand.hbm [shape: f32[24,128], index: 4, kind: output, shape index: {1}]  }
   0x1   :  { %v24_v1 = vld [vmem:[%s3481_s2] sm:$0xff]  ;;  %v25_v2 = vld [vmem:[%s3481_s2 + $0x8] sm:$0xff]  ;;  %v26_v3 = vld [vmem:[%s3481_s2 + $0x10] sm:$0xff] }
   0x2   :  { %v2249_v4 = vld [vmem:[%s3479_s0] sm:$0xff]  ;;  %v35_v5 = vshrl.u32 %v32_v0, 7  ;;  %v2098_v6 = vpack.c.bf16 %v25_v2, %v24_v1  ;;  %v27_v7 = vld [vmem:[%s3481_s2 + $0x18] sm:$0xff]  ;;  %v29_v10 = vld [vmem:[%s3481_s2 + $0x28] sm:$0xff] }
   0x3   :  { %v2102_v8 = vpack.c.bf16 %v27_v7, %v26_v3  ;;  %v28_v9 = vld [vmem:[%s3481_s2 + $0x20] sm:$0xff] }
   0x4   :  { %11 = vsyncpa [#allocation5], 0  ;;  %v2261_v11 = vsub.s32 2, %v35_v5  ;;  %v2263_v12 = vsub.s32 0, %v35_v5  ;;  %v2265_v13 = vsub.s32 4, %v35_v5  ;;  %v2267_v14 = vsub.s32 1, %v35_v5  ;;  %2099 = vmatprep.subr.bf16.mxu0 %v2098_v6  ;;  %2114 = vmatprep.subr.bf16.mxu1 %v2098_v6 }
   0x5   :  { %v2272_v15 = vld [vmem:[%s3479_s0 + $0x8] sm:$0xff]  ;;  %2101 = vmatpush3.bf16.msra.mxu0 %v2098_v6  ;;  %2118 = vmatpush3.bf16.msra.mxu1 %v2098_v6  ;;  %v2106_v18 = vpack.c.bf16 %v29_v10, %v28_v9  ;;  %v71_v21 = vsub.s32 5, %v35_v5  ;;  %v57_v22 = vsub.s32 3, %v35_v5  ;;  %v30_v23 = vld [vmem:[%s3481_s2 + $0x30] sm:$0xff]  ;;  %v31_v24 = vld [vmem:[%s3481_s2 + $0x38] sm:$0xff]  ;;  %v78_v27 = vsub.s32 6, %v35_v5 }
   0x6   :  { %v51_v16 = vrot.slane %v2249_v4, %v2261_v11  ;;  %v37_v17 = vrot.slane %v2249_v4, %v2263_v12  ;;  %2103 = vmatprep.subr.bf16.mxu0 %v2102_v8  ;;  %2115 = vmatprep.subr.bf16.mxu1 %v2102_v8  ;;  %v121_v19 = vrot.slane %v2272_v15, %v2265_v13  ;;  %v85_v31 = vsub.s32 7, %v35_v5  ;;  %v20_v34 = vld [vmem:[%s3479_s0 + $0x10] sm:$0xff]  ;;  %v21_v51 = vld [vmem:[%s3480_s1] sm:$0xff]  ;;  %v22_v52 = vld [vmem:[%s3480_s1 + $0x8] sm:$0xff] }
   0x7   :  { %v44_v20 = vrot.slane %v2249_v4, %v2267_v14  ;;  %v128_v25 = vrot.slane %v2272_v15, %v71_v21  ;;  %v58_v26 = vrot.slane %v2249_v4, %v57_v22  ;;  %v2110_v28 = vpack.c.bf16 %v31_v24, %v30_v23  ;;  %v23_v53 = vld [vmem:[%s3480_s1 + $0x10] sm:$0xff]  ;;  %s2208_s1 = smov [#allocation2]  }
   0x8   :  { %53 = vbcast.lane.b32.xlu1 %v51_v16, 256  ;;  %39 = vbcast.lane.b32.xlu0 %v37_v17, 256  ;;  %v135_v29 = vrot.slane %v2272_v15, %v78_v27  ;;  %v65_v30 = vrot.slane %v2249_v4, %v2265_v13  ;;  %v142_v32 = vrot.slane %v2272_v15, %v85_v31  ;;  %v2199_v37 = vmov 1   ;;  %s1939_s15 = sshll.u32 %s2208_s1, 4  ;;  %s2904_s15 = int_to_ptr.vmem [resolvable:$true] %s1939_s15 }
   0x9   :  { %2105 = vmatpush3.bf16.msra.mxu0 %v2102_v8  ;;  %2119 = vmatpush3.bf16.msra.mxu1 %v2102_v8  ;;  %v72_v33 = vrot.slane %v2249_v4, %v71_v21  ;;  %v149_v35 = vrot.slane %v20_v34, %v2263_v12  ;;  %v79_v36 = vrot.slane %v2249_v4, %v78_v27  ;;  %v2200_v42 = vmov 0   ;;  %s2151_s16 = scalar_lea.vmem %s2904_s15, 3072  ;;  %p2156_p1 = scmp.lt.s32.totalorder %s2904_s15, %s2904_s15 }
   0xa   :  { %2107 = vmatprep.subr.bf16.mxu0 %v2106_v18  ;;  %2116 = vmatprep.subr.bf16.mxu1 %v2106_v18  ;;  %v156_v38 = vrot.slane %v20_v34, %v2267_v14  ;;  %v86_v39 = vrot.slane %v2249_v4, %v85_v31  ;;  %v163_v40 = vrot.slane %v20_v34, %v2261_v11  ;;  %v2201_v54 = vmov 2   ;;  %p2152_p0 = scmp.ne.s32.totalorder %s2904_s15, %s2151_s16  ;;  %p2157_p2 = scmp.lt.s32.totalorder %s2151_s16, %s2151_s16 }
   0xb   :  { %2136 = vset.pattern.permute.xlu1 %v2199_v37  ;;  %v93_v41 = vrot.slane %v2272_v15, %v2263_v12  ;;  %2135 = vset.pattern.permute.xlu0 %v2200_v42  ;;  %v170_v43 = vrot.slane %v20_v34, %v57_v22  ;;  %v100_v44 = vrot.slane %v2272_v15, %v2267_v14  ;;  %v2202_v55 = vmov 3  }
   0xc   :  { %123 = vbcast.lane.b32.xlu1 %v121_v19, 256  ;;  %46 = vbcast.lane.b32.xlu0 %v44_v20, 256  ;;  %v177_v45 = vrot.slane %v20_v34, %v2265_v13  ;;  %v107_v46 = vrot.slane %v2272_v15, %v2261_v11  ;;  %v184_v47 = vrot.slane %v20_v34, %v71_v21  ;;  %v2203_v56 = vmov 4   ;;  %p2158_p3 = por %p2157_p2, %p2156_p1 }
   0xd   :  { %2109 = vmatpush3.bf16.msra.mxu0 %v2106_v18  ;;  %2120 = vmatpush3.bf16.msra.mxu1 %v2106_v18  ;;  %v114_v48 = vrot.slane %v2272_v15, %v57_v22  ;;  %v191_v49 = vrot.slane %v20_v34, %v78_v27  ;;  %v198_v50 = vrot.slane %v20_v34, %v85_v31  ;;  %v2204_v57 = vmov 5  }
   0xe   :  { %2111 = vmatprep.subr.bf16.mxu0 %v2110_v28  ;;  %2117 = vmatprep.subr.bf16.mxu1 %v2110_v28  ;;  %v2205_v58 = vmov 6   ;;  %v2206_v59 = vmov 7   ;;  %v2321_v60 = vand.u32 127, %v32_v0  ;;  %vm274_vm0 = vcmask 523264   ;;  %p2159_p4 = pnand %p2158_p3, %p2152_p0 }
   0xf   :  { %v2207_v63 = vmov 0.0  }
  0x10   :  { %130 = vbcast.lane.b32.xlu1 %v128_v25, 256  ;;  %60 = vbcast.lane.b32.xlu0 %v58_v26, 256 }
  0x11   :  { %2113 = vmatpush3.bf16.msra.mxu0 %v2110_v28  ;;  %2121 = vmatpush3.bf16.msra.mxu1 %v2110_v28 }
  0x14   :  { %137 = vbcast.lane.b32.xlu1 %v135_v29, 256  ;;  %67 = vbcast.lane.b32.xlu0 %v65_v30, 256 }
  0x18   :  { %144 = vbcast.lane.b32.xlu1 %v142_v32, 256  ;;  %74 = vbcast.lane.b32.xlu0 %v72_v33, 256 }
  0x1c   :  { %151 = vbcast.lane.b32.xlu1 %v149_v35, 256  ;;  %81 = vbcast.lane.b32.xlu0 %v79_v36, 256 }
  0x20   :  { %158 = vbcast.lane.b32.xlu1 %v156_v38, 256  ;;  %88 = vbcast.lane.b32.xlu0 %v86_v39, 256 }
  0x24   :  { %165 = vbcast.lane.b32.xlu1 %v163_v40, 256  ;;  %95 = vbcast.lane.b32.xlu0 %v93_v41, 256 }
  0x28   :  { %172 = vbcast.lane.b32.xlu1 %v170_v43, 256  ;;  %102 = vbcast.lane.b32.xlu0 %v100_v44, 256 }
  0x2c   :  { %179 = vbcast.lane.b32.xlu1 %v177_v45, 256  ;;  %109 = vbcast.lane.b32.xlu0 %v107_v46, 256 }
  0x30   :  { %186 = vbcast.lane.b32.xlu1 %v184_v47, 256  ;;  %116 = vbcast.lane.b32.xlu0 %v114_v48, 256 }
  0x34   :  { %193 = vbcast.lane.b32.xlu0 %v191_v49, 256  ;;  %200 = vbcast.lane.b32.xlu1 %v198_v50, 256 }
  0x38   :  { %638 = vperm.xlu1 %2136, %v21_v51   ;;  %558 = vperm.xlu0 %2135, %v21_v51  }
  0x3c   :  { %641 = vperm.xlu1 %2136, %v22_v52   ;;  %2137 = vset.pattern.permute.xlu0 %v2199_v37 }
  0x3d   :  { %644 = vperm.xlu0 %2137, %v23_v53  }
  0x40   :  { %2138 = vset.pattern.permute.xlu1 %v2200_v42 }
  0x41   :  { %562 = vperm.xlu1 %2138, %v22_v52   ;;  %2139 = vset.pattern.permute.xlu0 %v2201_v54 }
  0x42   :  { %812 = vperm.xlu0 %2139, %v21_v51  }
  0x45   :  { %566 = vperm.xlu1 %2138, %v23_v53  }
  0x46   :  { %2141 = vset.pattern.permute.xlu0 %v2202_v55 }
  0x47   :  { %986 = vperm.xlu0 %2141, %v21_v51  }
  0x49   :  { %2140 = vset.pattern.permute.xlu1 %v2201_v54 }
  0x4a   :  { %815 = vperm.xlu1 %2140, %v22_v52  }
  0x4b   :  { %2143 = vset.pattern.permute.xlu0 %v2203_v56 }
  0x4c   :  { %1160 = vperm.xlu0 %2143, %v21_v51  }
  0x4e   :  { %818 = vperm.xlu1 %2140, %v23_v53  }
  0x50   :  { %2145 = vset.pattern.permute.xlu0 %v2204_v57 }
  0x51   :  { %1334 = vperm.xlu0 %2145, %v21_v51  }
  0x52   :  { %2142 = vset.pattern.permute.xlu1 %v2202_v55 }
  0x53   :  { %989 = vperm.xlu1 %2142, %v22_v52  }
  0x55   :  { %2147 = vset.pattern.permute.xlu0 %v2205_v58 }
  0x56   :  { %1508 = vperm.xlu0 %2147, %v21_v51  }
  0x57   :  { %992 = vperm.xlu1 %2142, %v23_v53  }
  0x5a   :  { %2149 = vset.pattern.permute.xlu0 %v2206_v59 }
  0x5b   :  { %2144 = vset.pattern.permute.xlu1 %v2203_v56  ;;  %1682 = vperm.xlu0 %2149, %v21_v51  }
  0x5c   :  { %1163 = vperm.xlu1 %2144, %v22_v52  }
  0x60   :  { %1166 = vperm.xlu1 %2144, %v23_v53  }
  0x64   :  { %2146 = vset.pattern.permute.xlu1 %v2204_v57 }
  0x65   :  { %1337 = vperm.xlu1 %2146, %v22_v52  }
  0x69   :  { %1340 = vperm.xlu1 %2146, %v23_v53  }
  0x6d   :  { %2148 = vset.pattern.permute.xlu1 %v2205_v58 }
  0x6e   :  { %1511 = vperm.xlu1 %2148, %v22_v52  }
  0x72   :  { %1514 = vperm.xlu1 %2148, %v23_v53  }
  0x76   :  { %2150 = vset.pattern.permute.xlu1 %v2206_v59 }
  0x77   :  { %1685 = vperm.xlu1 %2150, %v22_v52  }
  0x7a   :  { %v54_v61 = vpop.permute.xlu1 %53  ;;  %v40_v62 = vpop.permute.xlu0 %39 }
  0x7b   :  { %vm202_vm1 = vcmp.eq.s32.totalorder %v40_v62, %v2321_v60  ;;  %1688 = vperm.xlu1 %2150, %v23_v53   ;;  %vm204_vm2 = vcmp.eq.s32.totalorder %v54_v61, %v2321_v60 }
  0x7c   :  { %v1966_v1 = vsel %vm202_vm1, 1.0, %v2207_v63  ;;  %v1968_v5 = vsel %vm204_vm2, 1.0, %v2207_v63 }
  0x7d   :  { %2062 = vmatprep.mubr.msk.f32.mxu0 %vm274_vm0, %v1966_v1 }
  0x7e   :  { %v124_v2 = vpop.permute.xlu1 %123  ;;  %v47_v3 = vpop.permute.xlu0 %46 }
  0x7f   :  { %vm214_vm3 = vcmp.eq.s32.totalorder %v124_v2, %v2321_v60  ;;  %vm203_vm4 = vcmp.eq.s32.totalorder %v47_v3, %v2321_v60 }
  0x80   :  { %v1967_v0 = vsel %vm203_vm4, 1.0, %v2207_v63  ;;  %v1978_v4 = vsel %vm214_vm3, 1.0, %v2207_v63 }
  0x81   :  { %2063 = vmatmul.mubr.msk.f32.vlgmr.msra.gmra.mrb[0].mxu0 %vm274_vm0, %v1967_v0  ;;  %2080 = vmatprep.mubr.msk.f32.mxu1 %vm274_vm0, %v1978_v4 }
  0x82   :  { %v131_v6 = vpop.permute.xlu1 %130  ;;  %2065 = vmatprep.mubr.msk.f32.mxu0 %vm274_vm0, %v1968_v5  ;;  %v61_v7 = vpop.permute.xlu0 %60 }
  0x83   :  { %vm215_vm5 = vcmp.eq.s32.totalorder %v131_v6, %v2321_v60  ;;  %vm205_vm6 = vcmp.eq.s32.totalorder %v61_v7, %v2321_v60 }
  0x84   :  { %v1979_v8 = vsel %vm215_vm5, 1.0, %v2207_v63  ;;  %v1969_v9 = vsel %vm205_vm6, 1.0, %v2207_v63 }
  0x85   :  { %2066 = vmatmul.mubr.msk.f32.gmra.mrb[2].mxu0 %vm274_vm0, %v1969_v9  ;;  %2081 = vmatmul.mubr.msk.f32.vlgmr.msra.gmra.mrb[0].mxu1 %vm274_vm0, %v1979_v8 }
  0x86   :  { %v138_v10 = vpop.permute.xlu1 %137  ;;  %v68_v11 = vpop.permute.xlu0 %67 }
  0x87   :  { %vm216_vm7 = vcmp.eq.s32.totalorder %v138_v10, %v2321_v60  ;;  %vm206_vm8 = vcmp.eq.s32.totalorder %v68_v11, %v2321_v60 }
  0x88   :  { %v1980_v12 = vsel %vm216_vm7, 1.0, %v2207_v63  ;;  %v1970_v13 = vsel %vm206_vm8, 1.0, %v2207_v63 }
  0x89   :  { %2068 = vmatprep.mubr.msk.f32.mxu0 %vm274_vm0, %v1970_v13  ;;  %2083 = vmatprep.mubr.msk.f32.mxu1 %vm274_vm0, %v1980_v12 }
  0x8a   :  { %v145_v14 = vpop.permute.xlu1 %144  ;;  %v75_v15 = vpop.permute.xlu0 %74 }
  0x8b   :  { %vm217_vm9 = vcmp.eq.s32.totalorder %v145_v14, %v2321_v60  ;;  %vm207_vm10 = vcmp.eq.s32.totalorder %v75_v15, %v2321_v60 }
  0x8c   :  { %v1981_v16 = vsel %vm217_vm9, 1.0, %v2207_v63  ;;  %v1971_v17 = vsel %vm207_vm10, 1.0, %v2207_v63 }
  0x8d   :  { %2069 = vmatmul.mubr.msk.f32.gmra.mrb[4].mxu0 %vm274_vm0, %v1971_v17  ;;  %2084 = vmatmul.mubr.msk.f32.gmra.mrb[2].mxu1 %vm274_vm0, %v1981_v16 }
  0x8e   :  { %v152_v18 = vpop.permute.xlu1 %151  ;;  %v82_v19 = vpop.permute.xlu0 %81 }
  0x8f   :  { %vm218_vm11 = vcmp.eq.s32.totalorder %v152_v18, %v2321_v60  ;;  %vm208_vm12 = vcmp.eq.s32.totalorder %v82_v19, %v2321_v60 }
  0x90   :  { %v1982_v20 = vsel %vm218_vm11, 1.0, %v2207_v63  ;;  %v1972_v21 = vsel %vm208_vm12, 1.0, %v2207_v63 }
  0x91   :  { %2071 = vmatprep.mubr.msk.f32.mxu0 %vm274_vm0, %v1972_v21  ;;  %2086 = vmatprep.mubr.msk.f32.mxu1 %vm274_vm0, %v1982_v20 }
  0x92   :  { %v159_v22 = vpop.permute.xlu1 %158  ;;  %v89_v23 = vpop.permute.xlu0 %88 }
  0x93   :  { %vm219_vm13 = vcmp.eq.s32.totalorder %v159_v22, %v2321_v60  ;;  %vm209_vm14 = vcmp.eq.s32.totalorder %v89_v23, %v2321_v60 }
  0x94   :  { %v1983_v24 = vsel %vm219_vm13, 1.0, %v2207_v63  ;;  %v1973_v25 = vsel %vm209_vm14, 1.0, %v2207_v63 }
  0x95   :  { %2072 = vmatmul.mubr.msk.f32.gmra.mrb[6].mxu0 %vm274_vm0, %v1973_v25  ;;  %2087 = vmatmul.mubr.msk.f32.gmra.mrb[4].mxu1 %vm274_vm0, %v1983_v24 }
  0x96   :  { %v166_v26 = vpop.permute.xlu1 %165  ;;  %v96_v27 = vpop.permute.xlu0 %95 }
  0x97   :  { %vm220_vm15 = vcmp.eq.s32.totalorder %v166_v26, %v2321_v60  ;;  %vm210_vm1 = vcmp.eq.s32.totalorder %v96_v27, %v2321_v60 }
  0x98   :  { %v1984_v28 = vsel %vm220_vm15, 1.0, %v2207_v63  ;;  %v1974_v29 = vsel %vm210_vm1, 1.0, %v2207_v63 }
  0x99   :  { %2074 = vmatprep.mubr.msk.f32.mxu0 %vm274_vm0, %v1974_v29  ;;  %2089 = vmatprep.mubr.msk.f32.mxu1 %vm274_vm0, %v1984_v28 }
  0x9a   :  { %v173_v30 = vpop.permute.xlu1 %172  ;;  %v103_v31 = vpop.permute.xlu0 %102 }
  0x9b   :  { %vm221_vm2 = vcmp.eq.s32.totalorder %v173_v30, %v2321_v60  ;;  %vm211_vm3 = vcmp.eq.s32.totalorder %v103_v31, %v2321_v60 }
  0x9c   :  { %v1985_v32 = vsel %vm221_vm2, 1.0, %v2207_v63  ;;  %v1975_v33 = vsel %vm211_vm3, 1.0, %v2207_v63 }
  0x9d   :  { %2075 = vmatmul.mubr.msk.f32.gmra.mrb[8].mxu0 %vm274_vm0, %v1975_v33  ;;  %2090 = vmatmul.mubr.msk.f32.gmra.mrb[6].mxu1 %vm274_vm0, %v1985_v32 }
  0x9e   :  { %v180_v34 = vpop.permute.xlu1 %179  ;;  %v110_v35 = vpop.permute.xlu0 %109 }
  0x9f   :  { %vm222_vm4 = vcmp.eq.s32.totalorder %v180_v34, %v2321_v60  ;;  %vm212_vm5 = vcmp.eq.s32.totalorder %v110_v35, %v2321_v60 }
  0xa0   :  { %v1986_v36 = vsel %vm222_vm4, 1.0, %v2207_v63  ;;  %v1976_v37 = vsel %vm212_vm5, 1.0, %v2207_v63 }
  0xa1   :  { %2077 = vmatprep.mubr.msk.f32.mxu0 %vm274_vm0, %v1976_v37  ;;  %2092 = vmatprep.mubr.msk.f32.mxu1 %vm274_vm0, %v1986_v36 }
  0xa2   :  { %v187_v38 = vpop.permute.xlu1 %186  ;;  %v117_v39 = vpop.permute.xlu0 %116 }
  0xa3   :  { %vm223_vm6 = vcmp.eq.s32.totalorder %v187_v38, %v2321_v60  ;;  %vm213_vm7 = vcmp.eq.s32.totalorder %v117_v39, %v2321_v60 }
  0xa4   :  { %v1987_v40 = vsel %vm223_vm6, 1.0, %v2207_v63  ;;  %v1977_v41 = vsel %vm213_vm7, 1.0, %v2207_v63 }
  0xa5   :  { %2078 = vmatmul.mubr.msk.f32.gmra.mrb[10].mxu0 %vm274_vm0, %v1977_v41  ;;  %2093 = vmatmul.mubr.msk.f32.gmra.mrb[8].mxu1 %vm274_vm0, %v1987_v40 }
  0xa6   :  { %v194_v42 = vpop.permute.xlu0 %193  ;;  %v201_v43 = vpop.permute.xlu1 %200 }
  0xa7   :  { %vm224_vm8 = vcmp.eq.s32.totalorder %v194_v42, %v2321_v60  ;;  %vm225_vm9 = vcmp.eq.s32.totalorder %v201_v43, %v2321_v60 }
  0xa8   :  { %v1988_v44 = vsel %vm224_vm8, 1.0, %v2207_v63  ;;  %v1989_v45 = vsel %vm225_vm9, 1.0, %v2207_v63 }
  0xa9   :  { %2095 = vmatprep.mubr.msk.f32.mxu1 %vm274_vm0, %v1988_v44 }
  0xaa   :  { %2096 = vmatmul.mubr.msk.f32.gmra.mrb[10].mxu1 %vm274_vm0, %v1989_v45 }
  0xb7   :  { %v2395_v46 = vpop.permute.xlu1 %638  ;;  %v2407_v52 = vpop.permute.xlu0 %558 }
  0xb8   :  { %v646_v59 = vrot.slane %v2395_v46, 7  ;;  %v648_v61 = vrot.slane %v2395_v46, 2  ;;  %v568_v3 = vrot.slane %v2407_v52, 1  ;;  %v570_v4 = vrot.slane %v2407_v52, 3 }
  0xbb   :  { %v2397_v47 = vpop.permute.xlu1 %641 }
  0xbc   :  { %v2411_v54 = vpop.permute.xlu0 %644  ;;  %v657_v14 = vrot.slane %v2397_v47, 4 }
  0xc0   :  { %v2399_v48 = vpop.permute.xlu1 %562 }
  0xc1   :  { %v2415_v56 = vpop.permute.xlu0 %812 }
  0xc2   :  { %v820_v32 = vrot.slane %v2415_v56, 6  ;;  %v821_v33 = vrot.slane %v2415_v56, 7  ;;  %v822_v34 = vrot.slane %v2415_v56, 1 }
  0xc4   :  { %v2401_v49 = vpop.permute.xlu1 %566 }
  0xc6   :  { %v2419_v58 = vpop.permute.xlu0 %986 }
  0xc7   :  { %v994_v21 = vrot.slane %v2419_v58, 5  ;;  %v995_v25 = vrot.slane %v2419_v58, 6 }
  0xc9   :  { %v2403_v50 = vpop.permute.xlu1 %815 }
  0xcb   :  { %v2446_v19 = vpop.permute.xlu0 %1160 }
  0xcc   :  { %v1168_v24 = vrot.slane %v2446_v19, 4  ;;  %v1169_v44 = vrot.slane %v2446_v19, 5  ;;  %v1171_v23 = vrot.slane %v2446_v19, 7 }
  0xcd   :  { %v2405_v51 = vpop.permute.xlu1 %818 }
  0xd0   :  { %v2474_v45 = vpop.permute.xlu0 %1334 }
  0xd1   :  { %3515 = vst [vmem:[#allocation8_spill] sm:$0xff] %v2474_v45  ;;  %v1342_v6 = vrot.slane %v2474_v45, 3  ;;  %v1343_v39 = vrot.slane %v2474_v45, 4  ;;  %v1345_v15 = vrot.slane %v2474_v45, 6 }
  0xd2   :  { %v2409_v53 = vpop.permute.xlu1 %989 }
  0xd5   :  { %v2502_v1 = vpop.permute.xlu0 %1508 }
  0xd6   :  { %v2413_v55 = vpop.permute.xlu1 %992  ;;  %3516 = vst [vmem:[#allocation9_spill] sm:$0xff] %v2502_v1  ;;  %v1516_v27 = vrot.slane %v2502_v1, 2  ;;  %v1517_v40 = vrot.slane %v2502_v1, 3  ;;  %v1519_v9 = vrot.slane %v2502_v1, 5 }
  0xda   :  { %v2530_v5 = vpop.permute.xlu0 %1682 }
  0xdb   :  { %v2417_v57 = vpop.permute.xlu1 %1163  ;;  %3517 = vst [vmem:[#allocation10_spill] sm:$0xff] %v2530_v5  ;;  %v1690_v17 = vrot.slane %v2530_v5, 1  ;;  %v1691_v42 = vrot.slane %v2530_v5, 2  ;;  %v1693_v31 = vrot.slane %v2530_v5, 4 }
  0xdf   :  { %v2436_v10 = vpop.permute.xlu1 %1166 }
  0xe4   :  { %v2464_v36 = vpop.permute.xlu1 %1337 }
  0xe8   :  { %v2492_v20 = vpop.permute.xlu1 %1340 }
  0xed   :  { %v2520_v30 = vpop.permute.xlu1 %1511 }
  0xf1   :  { %v2548_v63 = vpop.permute.xlu1 %1514 }
  0xf6   :  { %v2574_v2 = vpop.permute.xlu1 %1685 }
  0xfa   :  { %v2592_v8 = vpop.permute.xlu1 %1688 }
 0x154   :  { %v2064_v11 = vpop.f32.mrb[0].mxu0 }
 0x155   :  { %533 = vst [vmem:[#allocation2 + $0x8] sm:$0xff] %v2064_v11  ;;  %v692_v41 = vmul.f32 %v2064_v11, %v2395_v46  ;;  %v866_v43 = vmul.f32 %v2064_v11, %v821_v33  ;;  %v1040_v26 = vmul.f32 %v2064_v11, %v995_v25  ;;  %v413_v37 = vpop.f32.mrb[1].mxu0  ;;  %v1214_v12 = vmul.f32 %v2064_v11, %v1169_v44 }
 0x156   :  { %v1388_v16 = vmul.f32 %v2064_v11, %v1343_v39  ;;  %v2622_v22 = vmul.f32 %v2064_v11, %v1517_v40  ;;  %v2626_v13 = vmul.f32 %v2064_v11, %v1691_v42  ;;  %532 = vst [vmem:[#allocation2] sm:$0xff] %v413_v37  ;;  %v614_v25 = vmul.f32 %v2064_v11, %v568_v3 }
 0x157   :  { %v740_v33 = vrot.slane %v692_v41, 1  ;;  %v914_v7 = vrot.slane %v866_v43, 2  ;;  %v1088_v62 = vrot.slane %v1040_v26, 3  ;;  %v1262_v60 = vrot.slane %v1214_v12, 4 }
 0x158   :  { %v1436_v44 = vrot.slane %v1388_v16, 5  ;;  %v1610_v0 = vrot.slane %v2622_v22, 6  ;;  %v613_v39 = vmul.f32 %v2407_v52, %v413_v37  ;;  %v2067_v28 = vpop.f32.mrb[2].mxu0  ;;  %v2632_v40 = vpop.f32.mrb[0].mxu1  ;;  %v691_v42 = vmul.f32 %v646_v59, %v413_v37 }
 0x159   :  { %3518 = vst [vmem:[#allocation11_spill] sm:$0xff] %v2632_v40  ;;  %v788_v38 = vadd.f32 %v740_v33, %v614_v25  ;;  %v865_v29 = vmul.f32 %v820_v32, %v413_v37  ;;  %v1039_v3 = vmul.f32 %v994_v21, %v413_v37  ;;  %535 = vst [vmem:[#allocation2 + $0x18] sm:$0xff] %v2067_v28  ;;  %v2641_v11 = vpop.f32.mrb[3].mxu0  ;;  %v2643_v12 = vpop.f32.mrb[1].mxu1  ;;  %v1784_v16 = vrot.slane %v2626_v13, 7 }
 0x15a   :  { %545 = vst [vmem:[#allocation2 + $0x68] sm:$0xff] %v2632_v40  ;;  %v1213_v22 = vmul.f32 %v1168_v24, %v413_v37  ;;  %v1387_v59 = vmul.f32 %v1342_v6, %v413_v37  ;;  %v1561_v26 = vmul.f32 %v1516_v27, %v413_v37  ;;  %534 = vst [vmem:[#allocation2 + $0x10] sm:$0xff] %v2641_v11  ;;  %v739_v32 = vrot.slane %v691_v42, 1 }
 0x15b   :  { %544 = vst [vmem:[#allocation2 + $0x60] sm:$0xff] %v2643_v12  ;;  %v962_v21 = vadd.f32 %v914_v7, %v788_v38  ;;  %v913_v41 = vrot.slane %v865_v29, 2  ;;  %v2656_v43 = vmul.f32 %v1690_v17, %v413_v37  ;;  %v1087_v13 = vrot.slane %v1039_v3, 3 }
 0x15c   :  { %v1261_v25 = vrot.slane %v1213_v22, 4  ;;  %v1435_v24 = vrot.slane %v1387_v59, 5  ;;  %v1609_v33 = vrot.slane %v1561_v26, 6  ;;  %v787_v6 = vadd.f32 %v739_v32, %v613_v39 }
 0x15d   :  { %v1136_v35 = vadd.f32 %v1088_v62, %v962_v21  ;;  %v616_v27 = vmul.f32 %v2067_v28, %v570_v4  ;;  %v694_v18 = vmul.f32 %v2067_v28, %v648_v61  ;;  %v868_v7 = vmul.f32 %v2067_v28, %v822_v34 }
 0x15e   :  { %v1042_v29 = vmul.f32 %v2067_v28, %v2419_v58  ;;  %v1216_v17 = vmul.f32 %v2067_v28, %v1171_v23  ;;  %v1390_v37 = vmul.f32 %v2067_v28, %v1345_v15  ;;  %v961_v62 = vadd.f32 %v913_v41, %v787_v6 }
 0x15f   :  { %v1310_v38 = vadd.f32 %v1262_v60, %v1136_v35  ;;  %v742_v39 = vrot.slane %v694_v18, 1  ;;  %v2671_v4 = vmul.f32 %v2067_v28, %v1519_v9  ;;  %v1783_v61 = vrot.slane %v2656_v43, 7 }
 0x160   :  { %v916_v42 = vrot.slane %v868_v7, 2  ;;  %v1090_v3 = vrot.slane %v1042_v29, 3  ;;  %v1264_v34 = vrot.slane %v1216_v17, 4  ;;  %v2674_v22 = vpop.f32.mrb[4].mxu0  ;;  %v2676_v59 = vpop.f32.mrb[2].mxu1  ;;  %v1135_v26 = vadd.f32 %v1087_v13, %v961_v62 }
 0x161   :  { %3519 = vst [vmem:[#allocation12_spill] sm:$0xff] %v2674_v22  ;;  %3520 = vst [vmem:[#allocation13_spill] sm:$0xff] %v2676_v59  ;;  %v1484_v23 = vadd.f32 %v1436_v44, %v1310_v38  ;;  %v790_v21 = vadd.f32 %v742_v39, %v616_v27  ;;  %v1438_v15 = vrot.slane %v1390_v37, 5  ;;  %v2680_v60 = vpop.f32.mrb[5].mxu0  ;;  %v2682_v9 = vpop.f32.mrb[3].mxu1  ;;  %v1612_v18 = vrot.slane %v2671_v4, 6 }
 0x162   :  { %537 = vst [vmem:[#allocation2 + $0x28] sm:$0xff] %v2674_v22  ;;  %547 = vst [vmem:[#allocation2 + $0x78] sm:$0xff] %v2676_v59  ;;  %v2687_v35 = vmul.f32 %v2067_v28, %v1693_v31  ;;  %v704_v44 = vmul.f32 %v2632_v40, %v657_v14  ;;  %v3523_v32 = vrot.slane %v2403_v50, 3  ;;  %v1309_v13 = vadd.f32 %v1261_v25, %v1135_v26 }
 0x163   :  { %3521 = vst [vmem:[#allocation14_spill] sm:$0xff] %v2682_v9  ;;  %536 = vst [vmem:[#allocation2 + $0x20] sm:$0xff] %v2680_v60  ;;  %v1658_v43 = vadd.f32 %v1610_v0, %v1484_v23  ;;  %v964_v6 = vadd.f32 %v916_v42, %v790_v21  ;;  %v3524_v27 = vrot.slane %v2409_v53, 2  ;;  %v3525_v7 = vrot.slane %v2399_v48, 5 }
 0x164   :  { %3522 = vst [vmem:[#allocation15_spill] sm:$0xff] %v2687_v35  ;;  %v878_v41 = vmul.f32 %v2632_v40, %v3523_v32  ;;  %546 = vst [vmem:[#allocation2 + $0x70] sm:$0xff] %v2682_v9  ;;  %v752_v29 = vrot.slane %v704_v44, 1  ;;  %v3526_v17 = vrot.slane %v2417_v57, 1  ;;  %v1483_v0 = vadd.f32 %v1435_v24, %v1309_v13 }
 0x165   :  { %v1052_v28 = vmul.f32 %v2632_v40, %v3524_v27  ;;  %v626_v14 = vmul.f32 %v2632_v40, %v3525_v7  ;;  %v2707_v38 = vadd.f32 %v1784_v16, %v1658_v43  ;;  %v1138_v25 = vadd.f32 %v1090_v3, %v964_v6 }
 0x166   :  { %v1226_v37 = vmul.f32 %v2632_v40, %v3526_v17  ;;  %v926_v62 = vrot.slane %v878_v41, 2  ;;  %v2711_v42 = vmul.f32 %v2632_v40, %v2464_v36  ;;  %v3529_v23 = vrot.slane %v2520_v30, 7 }
 0x167   :  { %3527 = vst [vmem:[#allocation16_spill] sm:$0xff] %v2707_v38  ;;  %v800_v39 = vadd.f32 %v752_v29, %v626_v14  ;;  %v1100_v4 = vrot.slane %v1052_v28, 3  ;;  %v1657_v44 = vadd.f32 %v1609_v33, %v1483_v0  ;;  %v1312_v32 = vadd.f32 %v1264_v34, %v1138_v25 }
 0x168   :  { %3528 = vst [vmem:[#allocation17_spill] sm:$0xff] %v2711_v42  ;;  %v2716_v26 = vmul.f32 %v2632_v40, %v3529_v23  ;;  %v1274_v16 = vrot.slane %v1226_v37, 4  ;;  %v3531_v3 = vrot.slane %v2407_v52, 2  ;;  %v3532_v13 = vrot.slane %v2395_v46, 1  ;;  %v2726_v27 = vpop.f32.mrb[6].mxu0  ;;  %v2728_v28 = vpop.f32.mrb[4].mxu1 }
 0x169   :  { %v974_v43 = vadd.f32 %v926_v62, %v800_v39  ;;  %3533 = vst [vmem:[#allocation19_spill] sm:$0xff] %v2726_v27  ;;  %v1486_v7 = vadd.f32 %v1438_v15, %v1312_v32  ;;  %v867_v34 = vmul.f32 %v2415_v56, %v2641_v11  ;;  %v3534_v14 = vrot.slane %v2419_v58, 7  ;;  %539 = vst [vmem:[#allocation2 + $0x38] sm:$0xff] %v2726_v27  ;;  %v2738_v17 = vpop.f32.mrb[7].mxu0  ;;  %v2740_v37 = vpop.f32.mrb[5].mxu1 }
 0x16a   :  { %3530 = vst [vmem:[#allocation18_spill] sm:$0xff] %v2716_v26  ;;  %v615_v41 = vmul.f32 %v3531_v3, %v2641_v11  ;;  %v693_v6 = vmul.f32 %v3532_v13, %v2641_v11  ;;  %549 = vst [vmem:[#allocation2 + $0x88] sm:$0xff] %v2728_v28  ;;  %v3536_v15 = vrot.slane %v2446_v19, 6  ;;  %v3537_v39 = vrot.slane %v2474_v45, 5 }
 0x16b   :  { %v1041_v29 = vmul.f32 %v3534_v14, %v2641_v11  ;;  %3535 = vst [vmem:[#allocation20_spill] sm:$0xff] %v2738_v17  ;;  %v1148_v0 = vadd.f32 %v1100_v4, %v974_v43  ;;  %538 = vst [vmem:[#allocation2 + $0x30] sm:$0xff] %v2738_v17  ;;  %v2750_v32 = vadd.f32 %v1783_v61, %v1657_v44  ;;  %v915_v13 = vrot.slane %v867_v34, 2 }
 0x16c   :  { %v741_v25 = vrot.slane %v693_v6, 1  ;;  %v1215_v62 = vmul.f32 %v3536_v15, %v2641_v11  ;;  %v1389_v23 = vmul.f32 %v3537_v39, %v2641_v11  ;;  %548 = vst [vmem:[#allocation2 + $0x80] sm:$0xff] %v2740_v37  ;;  %v2752_v3 = vadd.f32 %v1612_v18, %v1486_v7 }
 0x16d   :  { %3538 = vst [vmem:[#allocation21_spill] sm:$0xff] %v2750_v32  ;;  %v3540_v4 = vrot.slane %v2502_v1, 4  ;;  %v2757_v6 = vadd.f32 %v1274_v16, %v1148_v0  ;;  %v1089_v15 = vrot.slane %v1041_v29, 3  ;;  %v3542_v33 = vrot.slane %v2530_v5, 3 }
 0x16e   :  { %3539 = vst [vmem:[#allocation22_spill] sm:$0xff] %v2752_v3  ;;  %v789_v14 = vadd.f32 %v741_v25, %v615_v41  ;;  %v1263_v21 = vrot.slane %v1215_v62, 4  ;;  %v1437_v31 = vrot.slane %v1389_v23, 5  ;;  %v3543_v61 = vrot.slane %v2397_v47, 3 }
 0x16f   :  { %v1563_v43 = vmul.f32 %v3540_v4, %v2641_v11  ;;  %3541 = vst [vmem:[#allocation23_spill] sm:$0xff] %v2757_v6  ;;  %v1737_v24 = vmul.f32 %v3542_v33, %v2641_v11  ;;  %v3544_v7 = vrot.slane %v2403_v50, 2  ;;  %v3545_v16 = vrot.slane %v2409_v53, 1 }
 0x170   :  { %v703_v18 = vmul.f32 %v3543_v61, %v2643_v12  ;;  %v963_v44 = vadd.f32 %v915_v13, %v789_v14  ;;  %v1225_v29 = vmul.f32 %v2417_v57, %v2643_v12  ;;  %v3546_v0 = vrot.slane %v2399_v48, 4 }
 0x171   :  { %v1611_v39 = vrot.slane %v1563_v43, 6  ;;  %v877_v34 = vmul.f32 %v3544_v7, %v2643_v12  ;;  %v1051_v41 = vmul.f32 %v3545_v16, %v2643_v12  ;;  %v3547_v25 = vrot.slane %v2464_v36, 7  ;;  %v2784_v7 = vpop.f32.mrb[8].mxu0  ;;  %v2786_v16 = vpop.f32.mrb[6].mxu1 }
 0x172   :  { %v625_v11 = vmul.f32 %v3546_v0, %v2643_v12  ;;  %v751_v33 = vrot.slane %v703_v18, 1  ;;  %v3548_v23 = vrot.slane %v2520_v30, 6  ;;  %v1137_v4 = vadd.f32 %v1089_v15, %v963_v44  ;;  %541 = vst [vmem:[#allocation2 + $0x48] sm:$0xff] %v2784_v7  ;;  %551 = vst [vmem:[#allocation2 + $0x98] sm:$0xff] %v2786_v16  ;;  %v2795_v15 = vpop.f32.mrb[9].mxu0 }
 0x173   :  { %v1399_v62 = vmul.f32 %v3547_v25, %v2643_v12  ;;  %v1785_v43 = vrot.slane %v1737_v24, 7  ;;  %v925_v14 = vrot.slane %v877_v34, 2  ;;  %v1099_v61 = vrot.slane %v1051_v41, 3  ;;  %v2797_v24 = vpop.f32.mrb[7].mxu1  ;;  %540 = vst [vmem:[#allocation2 + $0x40] sm:$0xff] %v2795_v15 }
 0x174   :  { %v2782_v13 = vmul.f32 %v3548_v23, %v2643_v12  ;;  %v799_v38 = vadd.f32 %v751_v33, %v625_v11  ;;  %v1273_v0 = vrot.slane %v1225_v29, 4  ;;  %v3550_v32 = vrot.slane %v2574_v2, 5  ;;  %550 = vst [vmem:[#allocation2 + $0x90] sm:$0xff] %v2797_v24 }
 0x175   :  { %v1447_v18 = vrot.slane %v1399_v62, 5  ;;  %v1311_v44 = vadd.f32 %v1263_v21, %v1137_v4  ;;  %v3552_v41 = vrot.slane %v2395_v46, 4  ;;  %v3553_v11 = vrot.slane %v2415_v56, 3 }
 0x176   :  { %3549 = vst [vmem:[#allocation24_spill] sm:$0xff] %v2782_v13  ;;  %v2791_v25 = vmul.f32 %v3550_v32, %v2643_v12  ;;  %v973_v32 = vadd.f32 %v925_v14, %v799_v38  ;;  %v3554_v33 = vrot.slane %v2407_v52, 5  ;;  %v3555_v21 = vrot.slane %v2419_v58, 2 }
 0x177   :  { %v696_v29 = vmul.f32 %v2674_v22, %v3552_v41  ;;  %v870_v12 = vmul.f32 %v2674_v22, %v3553_v11  ;;  %v3556_v4 = vrot.slane %v2446_v19, 1  ;;  %v1485_v34 = vadd.f32 %v1437_v31, %v1311_v44 }
 0x178   :  { %3551 = vst [vmem:[#allocation25_spill] sm:$0xff] %v2791_v25  ;;  %v618_v62 = vmul.f32 %v2674_v22, %v3554_v33  ;;  %v1044_v23 = vmul.f32 %v2674_v22, %v3555_v21  ;;  %v2820_v3 = vmul.f32 %v2674_v22, %v2474_v45  ;;  %v1147_v38 = vadd.f32 %v1099_v61, %v973_v32 }
 0x179   :  { %v1218_v41 = vmul.f32 %v2674_v22, %v3556_v4  ;;  %v744_v35 = vrot.slane %v696_v29, 1  ;;  %v918_v14 = vrot.slane %v870_v12, 2  ;;  %v3558_v33 = vrot.slane %v2502_v1, 7 }
 0x17a   :  { %3557 = vst [vmem:[#allocation26_spill] sm:$0xff] %v2820_v3  ;;  %v1092_v40 = vrot.slane %v1044_v23, 3  ;;  %v1659_v21 = vadd.f32 %v1611_v39, %v1485_v34  ;;  %v1321_v44 = vadd.f32 %v1273_v0, %v1147_v38  ;;  %v3560_v29 = vrot.slane %v2399_v48, 7 }
 0x17b   :  { %v2825_v26 = vmul.f32 %v2674_v22, %v3558_v33  ;;  %v792_v13 = vadd.f32 %v744_v35, %v618_v62  ;;  %v1266_v42 = vrot.slane %v1218_v41, 4  ;;  %v3561_v11 = vrot.slane %v2397_v47, 6  ;;  %v2847_v62 = vpop.f32.mrb[10].mxu0  ;;  %v2849_v41 = vpop.f32.mrb[8].mxu1 }
 0x17c   :  { %v628_v4 = vmul.f32 %v2676_v59, %v3560_v29  ;;  %v3562_v12 = vrot.slane %v2403_v50, 5  ;;  %v2839_v23 = vadd.f32 %v1785_v43, %v1659_v21  ;;  %v3564_v0 = vrot.slane %v2409_v53, 4  ;;  %543 = vst [vmem:[#allocation2 + $0x58] sm:$0xff] %v2847_v62  ;;  %553 = vst [vmem:[#allocation2 + $0xa8] sm:$0xff] %v2849_v41  ;;  %v2863_v21 = vpop.f32.mrb[9].mxu1 }
 0x17d   :  { %3559 = vst [vmem:[#allocation27_spill] sm:$0xff] %v2825_v26  ;;  %v706_v61 = vmul.f32 %v2676_v59, %v3561_v11  ;;  %v966_v35 = vadd.f32 %v918_v14, %v792_v13  ;;  %v2851_v11 = vadd.f32 %v1447_v18, %v1321_v44  ;;  %v3566_v43 = vrot.slane %v2417_v57, 3  ;;  %v2861_v14 = vpop.f32.mrb[11].mxu0  ;;  %552 = vst [vmem:[#allocation2 + $0xa0] sm:$0xff] %v2863_v21 }
 0x17e   :  { %v2837_v32 = vmul.f32 %v2676_v59, %v3562_v12  ;;  %3563 = vst [vmem:[#allocation28_spill] sm:$0xff] %v2839_v23  ;;  %v2845_v34 = vmul.f32 %v2676_v59, %v3564_v0  ;;  %v3567_v44 = vrot.slane %v2407_v52, 4  ;;  %v3568_v12 = vrot.slane %v2395_v46, 3  ;;  %542 = vst [vmem:[#allocation2 + $0x50] sm:$0xff] %v2861_v14 }
 0x17f   :  { %3565 = vst [vmem:[#allocation29_spill] sm:$0xff] %v2851_v11  ;;  %v754_v38 = vrot.slane %v706_v61, 1  ;;  %v2857_v13 = vmul.f32 %v2676_v59, %v3566_v43  ;;  %v1140_v18 = vadd.f32 %v1092_v40, %v966_v35  ;;  %v3569_v29 = vrot.slane %v2415_v56, 2 }
 0x180   :  { %v617_v61 = vmul.f32 %v3567_v44, %v2680_v60  ;;  %v695_v0 = vmul.f32 %v3568_v12, %v2680_v60  ;;  %v3570_v35 = vrot.slane %v2419_v58, 1  ;;  %v1217_v39 = vmul.f32 %v2446_v19, %v2680_v60 }
 0x181   :  { %v869_v40 = vmul.f32 %v3569_v29, %v2680_v60  ;;  %v2883_v12 = vadd.f32 %v754_v38, %v628_v4  ;;  %v3571_v33 = vrot.slane %v2474_v45, 7  ;;  %v3572_v43 = vrot.slane %v2502_v1, 6  ;;  %v2902_v38 = vpop.f32.mrb[10].mxu1 }
 0x182   :  { %v1043_v44 = vmul.f32 %v3570_v35, %v2680_v60  ;;  %v743_v31 = vrot.slane %v695_v0, 1  ;;  %v2895_v29 = vadd.f32 %v1266_v42, %v1140_v18  ;;  %v3575_v11 = vrot.slane %v2530_v5, 5  ;;  %555 = vst [vmem:[#allocation2 + $0xb8] sm:$0xff] %v2902_v38  ;;  %v2909_v18 = vpop.f32.mrb[11].mxu1 }
 0x183   :  { %v2888_v23 = vmul.f32 %v3571_v33, %v2680_v60  ;;  %v2893_v25 = vmul.f32 %v3572_v43, %v2680_v60  ;;  %v917_v22 = vrot.slane %v869_v40, 2  ;;  %v1265_v0 = vrot.slane %v1217_v39, 4  ;;  %554 = vst [vmem:[#allocation2 + $0xb0] sm:$0xff] %v2909_v18 }
 0x184   :  { %3574 = vst [vmem:[#allocation31_spill] sm:$0xff] %v2895_v29  ;;  %v1091_v35 = vrot.slane %v1043_v44, 3  ;;  %v2900_v4 = vmul.f32 %v3575_v11, %v2680_v60  ;;  %v791_v33 = vadd.f32 %v743_v31, %v617_v61  ;;  %v3577_v60 = vrot.slane %v2399_v48, 6 }
 0x185   :  { %3573 = vst [vmem:[#allocation30_spill] sm:$0xff] %v2893_v25  ;;  %v1439_v43 = vrot.slane %v2888_v23, 5  ;;  %v3578_v40 = vrot.slane %v2397_v47, 5  ;;  %v3579_v31 = vrot.slane %v2403_v50, 4  ;;  %v3580_v23 = vrot.slane %v2409_v53, 3 }
 0x186   :  { %3576 = vst [vmem:[#allocation32_spill] sm:$0xff] %v2900_v4  ;;  %v627_v11 = vmul.f32 %v3577_v60, %v2682_v9  ;;  %v965_v42 = vadd.f32 %v917_v22, %v791_v33  ;;  %v3581_v60 = vrot.slane %v2417_v57, 2 }
 0x187   :  { %v705_v44 = vmul.f32 %v3578_v40, %v2682_v9  ;;  %v879_v39 = vmul.f32 %v3579_v31, %v2682_v9  ;;  %v1053_v61 = vmul.f32 %v3580_v23, %v2682_v9  ;;  %v3583_v40 = vrot.slane %v2464_v36, 1 }
 0x188   :  { %v2928_v26 = vmul.f32 %v3581_v60, %v2682_v9 }
 0x189   :  { %v2933_v25 = vmul.f32 %v3583_v40, %v2682_v9 }
 0x18a   :  { %3582 = vst [vmem:[#allocation33_spill] sm:$0xff] %v2928_v26 }
 0x18b   :  { %3584 = vst [vmem:[#allocation34_spill] sm:$0xff] %v2933_v25 }
 0x18c   :  { %2162 = shalt.err (!%p2159_p4)
}
 0x18d   :  { %s2163_s19 = scalar_lea.hbm %s3482_s3, 3072 }
 0x18e   :  { %p2164_p5 = scmp.ne.s32.totalorder %s3482_s3, %s2163_s19  ;;  %p2167_p6 = scmp.lt.u32.totalorder %s2163_s19, %s3482_s3 }
 0x190   :  { %p2169_p7 = pnand %p2167_p6, %p2164_p5 }
 0x192   :  { %2172 = shalt.err (!%p2169_p7)
}
 0x193   :  { %s2209_s24 = smov 128   ;;  %s2210_s25 = smov 8   ;;  %v753_v22 = vrot.slane %v705_v44, 1  ;;  %v927_v33 = vrot.slane %v879_v39, 2  ;;  %v3585_v31 = vrot.slane %v2407_v52, 7  ;;  %v3586_v60 = vrot.slane %v2395_v46, 6 }
 0x194   :  { %1945 = dma.vmem_to_hbm [thread:$0]  %s2904_s15, 3072, %s3482_s3, [#allocation3], %s2209_s24, %s2209_s24, %s2210_s25   ;;  %v1139_v5 = vadd.f32 %v1091_v35, %v965_v42  ;;  %v1101_v4 = vrot.slane %v1053_v61, 3  ;;  %v3587_v1 = vrot.slane %v2415_v56, 5  ;;  %v3588_v29 = vrot.slane %v2419_v58, 4 }
 0x195   :  { %v620_v23 = vmul.f32 %v2726_v27, %v3585_v31  ;;  %v698_v40 = vmul.f32 %v2726_v27, %v3586_v60  ;;  %v801_v3 = vadd.f32 %v753_v22, %v627_v11  ;;  %v3589_v42 = vrot.slane %v2446_v19, 3  ;;  %s2211_s3 = smov [#allocation4]  }
 0x196   :  { %v2965_v6 = vmul.f32 %v2726_v27, %v3587_v1  ;;  %v2971_v31 = vmul.f32 %v2726_v27, %v3588_v29  ;;  %v1313_v59 = vadd.f32 %v1265_v0, %v1139_v5  ;;  %v708_v1 = vmul.f32 %v2728_v28, %v2411_v54  ;;  %s1951_s28 = sshll.u32 %s2211_s3, 4  ;;  %s1952_s28 = int_to_ptr.vmem [resolvable:$true] %s1951_s28 }
 0x197   :  { %v746_v39 = vrot.slane %v698_v40, 1  ;;  %v2977_v61 = vmul.f32 %v2726_v27, %v3589_v42  ;;  %v975_v11 = vadd.f32 %v927_v33, %v801_v3  ;;  %v3590_v60 = vrot.slane %v2401_v49, 1  ;;  %s2173_s29 = scalar_lea.vmem %s1952_s28, 384  ;;  %p2178_p9 = scmp.lt.s32.totalorder %s1952_s28, %s1952_s28 }
 0x198   :  { %v3591_v29 = vrot.slane %v2405_v51, 7  ;;  %v756_v44 = vrot.slane %v708_v1, 1  ;;  %v3592_v42 = vrot.slane %v2413_v55, 6  ;;  %v3593_v35 = vrot.slane %v2436_v10, 5  ;;  %p2174_p8 = scmp.ne.s32.totalorder %s1952_s28, %s2173_s29  ;;  %p2179_p10 = scmp.lt.s32.totalorder %s2173_s29, %s2173_s29 }
 0x199   :  { %v2981_v22 = vadd.f32 %v746_v39, %v620_v23  ;;  %v630_v40 = vmul.f32 %v2728_v28, %v3590_v60  ;;  %v2996_v33 = vadd.f32 %v1439_v43, %v1313_v59  ;;  %v2998_v23 = vadd.f32 %v1101_v4, %v975_v11 }
 0x19a   :  { %v882_v5 = vmul.f32 %v2728_v28, %v3591_v29  ;;  %v1056_v9 = vmul.f32 %v2728_v28, %v3592_v42  ;;  %v1230_v3 = vmul.f32 %v2728_v28, %v3593_v35  ;;  %v3596_v39 = vrot.slane %v2492_v20, 4  ;;  %p2180_p11 = por %p2179_p10, %p2178_p9 }
 0x19b   :  { %3594 = vst [vmem:[#allocation35_spill] sm:$0xff] %v2996_v33  ;;  %3595 = vst [vmem:[#allocation36_spill] sm:$0xff] %v2998_v23  ;;  %v3597_v29 = vrot.slane %v2548_v63, 3  ;;  %v804_v0 = vadd.f32 %v756_v44, %v630_v40  ;;  %v3598_v42 = vrot.slane %v2592_v8, 2  ;;  %v3599_v4 = vrot.slane %v2395_v46, 5 }
 0x19c   :  { %v1404_v60 = vmul.f32 %v2728_v28, %v3596_v39  ;;  %v930_v25 = vrot.slane %v882_v5, 2  ;;  %v1104_v27 = vrot.slane %v1056_v9, 3  ;;  %v1278_v35 = vrot.slane %v1230_v3, 4  ;;  %p2181_p12 = pnand %p2180_p11, %p2174_p8 }
 0x19d   :  { %v1578_v1 = vmul.f32 %v2728_v28, %v3597_v29  ;;  %v1752_v26 = vmul.f32 %v2728_v28, %v3598_v42  ;;  %v697_v11 = vmul.f32 %v3599_v4, %v2738_v17  ;;  %v3600_v39 = vrot.slane %v2407_v52, 6 }
 0x19e   :  { %v1452_v59 = vrot.slane %v1404_v60, 5  ;;  %v978_v33 = vadd.f32 %v930_v25, %v804_v0  ;;  %v3601_v44 = vrot.slane %v2415_v56, 4  ;;  %v3602_v40 = vrot.slane %v2419_v58, 3 }
 0x19f   :  { %v1626_v43 = vrot.slane %v1578_v1, 6  ;;  %v619_v23 = vmul.f32 %v3600_v39, %v2738_v17  ;;  %v1800_v5 = vrot.slane %v1752_v26, 7  ;;  %v745_v3 = vrot.slane %v697_v11, 1 }
 0x1a0   :  { %v871_v9 = vmul.f32 %v3601_v44, %v2738_v17  ;;  %v1045_v28 = vmul.f32 %v3602_v40, %v2738_v17  ;;  %v3603_v60 = vrot.slane %v2446_v19, 2  ;;  %v3605_v25 = vrot.slane %v2474_v45, 1 }
 0x1a1   :  { %v1152_v0 = vadd.f32 %v1104_v27, %v978_v33  ;;  %v629_v56 = vmul.f32 %v2401_v49, %v2740_v37  ;;  %v3607_v58 = vrot.slane %v2411_v54, 7  ;;  %v793_v1 = vadd.f32 %v745_v3, %v619_v23 }
 0x1a2   :  { %v3024_v46 = vmul.f32 %v3603_v60, %v2738_v17  ;;  %v3029_v52 = vmul.f32 %v3605_v25, %v2738_v17  ;;  %v919_v29 = vrot.slane %v871_v9, 2  ;;  %v1093_v42 = vrot.slane %v1045_v28, 3 }
 0x1a3   :  { %v707_v26 = vmul.f32 %v3607_v58, %v2740_v37  ;;  %v3608_v4 = vrot.slane %v2405_v51, 6  ;;  %v1326_v39 = vadd.f32 %v1278_v35, %v1152_v0  ;;  %v3609_v27 = vrot.slane %v2413_v55, 5 }
 0x1a4   :  { %3604 = vst [vmem:[#allocation37_spill] sm:$0xff] %v3024_v46  ;;  %3606 = vst [vmem:[#allocation38_spill] sm:$0xff] %v3029_v52  ;;  %v3610_v9 = vrot.slane %v2436_v10, 4  ;;  %v967_v60 = vadd.f32 %v919_v29, %v793_v1  ;;  %v3611_v28 = vrot.slane %v2492_v20, 3  ;;  %v3612_v25 = vrot.slane %v2548_v63, 2 }
 0x1a5   :  { %v881_v11 = vmul.f32 %v3608_v4, %v2740_v37  ;;  %v755_v44 = vrot.slane %v707_v26, 1  ;;  %v1055_v33 = vmul.f32 %v3609_v27, %v2740_v37  ;;  %v1500_v0 = vadd.f32 %v1452_v59, %v1326_v39 }
 0x1a6   :  { %v1229_v40 = vmul.f32 %v3610_v9, %v2740_v37  ;;  %v1403_v3 = vmul.f32 %v3611_v28, %v2740_v37  ;;  %v1577_v35 = vmul.f32 %v3612_v25, %v2740_v37  ;;  %v3053_v27 = vadd.f32 %v1093_v42, %v967_v60 }
 0x1a7   :  { %v803_v58 = vadd.f32 %v755_v44, %v629_v56  ;;  %v929_v26 = vrot.slane %v881_v11, 2  ;;  %v1103_v4 = vrot.slane %v1055_v33, 3  ;;  %v3613_v29 = vrot.slane %v2592_v8, 1 }
 0x1a8   :  { %v1277_v19 = vrot.slane %v1229_v40, 4  ;;  %v1451_v17 = vrot.slane %v1403_v3, 5  ;;  %v1674_v9 = vadd.f32 %v1626_v43, %v1500_v0  ;;  %v1625_v52 = vrot.slane %v1577_v35, 6 }
 0x1a9   :  { %v1751_v1 = vmul.f32 %v3613_v29, %v2740_v37  ;;  %v977_v23 = vadd.f32 %v929_v26, %v803_v58  ;;  %v700_v28 = vmul.f32 %v2784_v7, %v2397_v47  ;;  %v3614_v25 = vrot.slane %v2399_v48, 1 }
 0x1aa   :  { %v3615_v56 = vrot.slane %v2403_v50, 7  ;;  %v3616_v11 = vrot.slane %v2409_v53, 6  ;;  %v3617_v37 = vrot.slane %v2417_v57, 5  ;;  %v3072_v44 = vadd.f32 %v1800_v5, %v1674_v9 }
 0x1ab   :  { %v622_v59 = vmul.f32 %v2784_v7, %v3614_v25  ;;  %v1151_v33 = vadd.f32 %v1103_v4, %v977_v23  ;;  %v748_v40 = vrot.slane %v700_v28, 1  ;;  %v3619_v60 = vrot.slane %v2464_v36, 4 }
 0x1ac   :  { %v874_v42 = vmul.f32 %v2784_v7, %v3615_v56  ;;  %v1048_v39 = vmul.f32 %v2784_v7, %v3616_v11  ;;  %v1222_v43 = vmul.f32 %v2784_v7, %v3617_v37  ;;  %3618 = vst [vmem:[#allocation39_spill] sm:$0xff] %v3072_v44  ;;  %v1799_v35 = vrot.slane %v1751_v1, 7 }
 0x1ad   :  { %v1396_v3 = vmul.f32 %v2784_v7, %v3619_v60  ;;  %v3620_v26 = vrot.slane %v2520_v30, 3  ;;  %v1325_v56 = vadd.f32 %v1277_v19, %v1151_v33  ;;  %v796_v11 = vadd.f32 %v748_v40, %v622_v59 }
 0x1ae   :  { %v922_v0 = vrot.slane %v874_v42, 2  ;;  %v1096_v58 = vrot.slane %v1048_v39, 3  ;;  %v1270_v37 = vrot.slane %v1222_v43, 4  ;;  %v3621_v23 = vrot.slane %v2574_v2, 2 }
 0x1af   :  { %v1570_v29 = vmul.f32 %v2784_v7, %v3620_v26  ;;  %v1444_v5 = vrot.slane %v1396_v3, 5  ;;  %v3622_v28 = vrot.slane %v2411_v54, 2  ;;  %v1499_v42 = vadd.f32 %v1451_v17, %v1325_v56 }
 0x1b0   :  { %v1744_v4 = vmul.f32 %v2784_v7, %v3621_v23  ;;  %v970_v39 = vadd.f32 %v922_v0, %v796_v11  ;;  %v3623_v60 = vrot.slane %v2405_v51, 1  ;;  %v1058_v19 = vmul.f32 %v2786_v16, %v2413_v55 }
 0x1b1   :  { %v1618_v9 = vrot.slane %v1570_v29, 6  ;;  %v710_v1 = vmul.f32 %v2786_v16, %v3622_v28  ;;  %v3624_v59 = vrot.slane %v2401_v49, 3  ;;  %v3625_v7 = vrot.slane %v2436_v10, 7 }
 0x1b2   :  { %v884_v26 = vmul.f32 %v2786_v16, %v3623_v60  ;;  %v3626_v3 = vrot.slane %v2492_v20, 6  ;;  %v1673_v0 = vadd.f32 %v1625_v52, %v1499_v42  ;;  %v1144_v29 = vadd.f32 %v1096_v58, %v970_v39 }
 0x1b3   :  { %v632_v43 = vmul.f32 %v2786_v16, %v3624_v59  ;;  %v758_v33 = vrot.slane %v710_v1, 1  ;;  %v1232_v40 = vmul.f32 %v2786_v16, %v3625_v7  ;;  %v1792_v56 = vrot.slane %v1744_v4, 7 }
 0x1b4   :  { %v1406_v17 = vmul.f32 %v2786_v16, %v3626_v3  ;;  %v932_v11 = vrot.slane %v884_v26, 2  ;;  %v1106_v28 = vrot.slane %v1058_v19, 3  ;;  %v3627_v25 = vrot.slane %v2548_v63, 5 }
 0x1b5   :  { %v806_v23 = vadd.f32 %v758_v33, %v632_v43  ;;  %v1280_v60 = vrot.slane %v1232_v40, 4  ;;  %v3104_v1 = vadd.f32 %v1799_v35, %v1673_v0  ;;  %v1318_v44 = vadd.f32 %v1270_v37, %v1144_v29 }
 0x1b6   :  { %v1580_v59 = vmul.f32 %v2786_v16, %v3627_v25  ;;  %v1454_v45 = vrot.slane %v1406_v17, 5  ;;  %v3628_v7 = vrot.slane %v2592_v8, 4  ;;  %v621_v58 = vmul.f32 %v2399_v48, %v2795_v15 }
 0x1b7   :  { %v980_v52 = vadd.f32 %v932_v11, %v806_v23  ;;  %v3629_v4 = vrot.slane %v2397_v47, 7  ;;  %v3630_v25 = vrot.slane %v2403_v50, 6  ;;  %v1492_v39 = vadd.f32 %v1444_v5, %v1318_v44 }
 0x1b8   :  { %v3109_v46 = vmul.f32 %v2786_v16, %v3628_v7  ;;  %v1628_v37 = vrot.slane %v1580_v59, 6  ;;  %v3631_v26 = vrot.slane %v2409_v53, 5  ;;  %v3632_v16 = vrot.slane %v2417_v57, 4 }
 0x1b9   :  { %v699_v42 = vmul.f32 %v3629_v4, %v2795_v15  ;;  %v873_v35 = vmul.f32 %v3630_v25, %v2795_v15  ;;  %v1154_v33 = vadd.f32 %v1106_v28, %v980_v52  ;;  %v3633_v17 = vrot.slane %v2464_v36, 3 }
 0x1ba   :  { %v1047_v19 = vmul.f32 %v3631_v26, %v2795_v15  ;;  %v1221_v43 = vmul.f32 %v3632_v16, %v2795_v15  ;;  %v1666_v29 = vadd.f32 %v1618_v9, %v1492_v39  ;;  %v3634_v5 = vrot.slane %v2520_v30, 2 }
 0x1bb   :  { %v747_v3 = vrot.slane %v699_v42, 1  ;;  %v1395_v0 = vmul.f32 %v3633_v17, %v2795_v15  ;;  %v921_v11 = vrot.slane %v873_v35, 2  ;;  %v1328_v59 = vadd.f32 %v1280_v60, %v1154_v33 }
 0x1bc   :  { %v1095_v44 = vrot.slane %v1047_v19, 3  ;;  %v1569_v23 = vmul.f32 %v3634_v5, %v2795_v15  ;;  %v1269_v4 = vrot.slane %v1221_v43, 4  ;;  %v3635_v28 = vrot.slane %v2574_v2, 1 }
 0x1bd   :  { %v795_v7 = vadd.f32 %v747_v3, %v621_v58  ;;  %v3135_v25 = vadd.f32 %v1792_v56, %v1666_v29  ;;  %v1443_v42 = vrot.slane %v1395_v0, 5  ;;  %v3636_v9 = vrot.slane %v2411_v54, 1 }
 0x1be   :  { %v1743_v52 = vmul.f32 %v3635_v28, %v2795_v15  ;;  %v1617_v26 = vrot.slane %v1569_v23, 6  ;;  %v1502_v39 = vadd.f32 %v1454_v45, %v1328_v59  ;;  %v3637_v16 = vrot.slane %v2401_v49, 2 }
 0x1bf   :  { %v709_v35 = vmul.f32 %v3636_v9, %v2797_v24  ;;  %v969_v19 = vadd.f32 %v921_v11, %v795_v7  ;;  %v883_v58 = vmul.f32 %v2405_v51, %v2797_v24  ;;  %v3638_v15 = vrot.slane %v2413_v55, 7 }
 0x1c0   :  { %v631_v60 = vmul.f32 %v3637_v16, %v2797_v24  ;;  %v1791_v43 = vrot.slane %v1743_v52, 7  ;;  %v3639_v3 = vrot.slane %v2436_v10, 6  ;;  %v3152_v0 = vadd.f32 %v1628_v37, %v1502_v39 }
 0x1c1   :  { %v757_v33 = vrot.slane %v709_v35, 1  ;;  %v1057_v56 = vmul.f32 %v3638_v15, %v2797_v24  ;;  %v1143_v29 = vadd.f32 %v1095_v44, %v969_v19  ;;  %v3640_v11 = vrot.slane %v2492_v20, 5 }
 0x1c2   :  { %v1231_v17 = vmul.f32 %v3639_v3, %v2797_v24  ;;  %v931_v59 = vrot.slane %v883_v58, 2  ;;  %v3641_v28 = vrot.slane %v2548_v63, 4  ;;  %v3642_v15 = vrot.slane %v2592_v8, 3 }
 0x1c3   :  { %v1405_v5 = vmul.f32 %v3640_v11, %v2797_v24  ;;  %v805_v23 = vadd.f32 %v757_v33, %v631_v60  ;;  %v1105_v7 = vrot.slane %v1057_v56, 3  ;;  %v1317_v9 = vadd.f32 %v1269_v4, %v1143_v29 }
 0x1c4   :  { %v1579_v52 = vmul.f32 %v3641_v28, %v2797_v24  ;;  %v1279_v35 = vrot.slane %v1231_v17, 4  ;;  %v1753_v37 = vmul.f32 %v3642_v15, %v2797_v24  ;;  %v3643_v44 = vrot.slane %v2399_v48, 3 }
 0x1c5   :  { %v1453_v16 = vrot.slane %v1405_v5, 5  ;;  %v979_v39 = vadd.f32 %v931_v59, %v805_v23  ;;  %v3644_v60 = vrot.slane %v2397_v47, 2  ;;  %v3645_v33 = vrot.slane %v2403_v50, 1 }
 0x1c6   :  { %v624_v19 = vmul.f32 %v2847_v62, %v3643_v44  ;;  %v1491_v4 = vadd.f32 %v1443_v42, %v1317_v9  ;;  %v1627_v3 = vrot.slane %v1579_v52, 6  ;;  %v1050_v17 = vmul.f32 %v2847_v62, %v2409_v53 }
 0x1c7   :  { %v702_v58 = vmul.f32 %v2847_v62, %v3644_v60  ;;  %v876_v56 = vmul.f32 %v2847_v62, %v3645_v33  ;;  %v3646_v24 = vrot.slane %v2417_v57, 7  ;;  %v1153_v11 = vadd.f32 %v1105_v7, %v979_v39 }
 0x1c8   :  { %v1801_v5 = vrot.slane %v1753_v37, 7  ;;  %v3647_v59 = vrot.slane %v2464_v36, 6  ;;  %v1665_v15 = vadd.f32 %v1617_v26, %v1491_v4  ;;  %v1098_v60 = vrot.slane %v1050_v17, 3 }
 0x1c9   :  { %v1224_v29 = vmul.f32 %v2847_v62, %v3646_v24  ;;  %v750_v23 = vrot.slane %v702_v58, 1  ;;  %v924_v44 = vrot.slane %v876_v56, 2  ;;  %v3648_v42 = vrot.slane %v2520_v30, 5 }
 0x1ca   :  { %v1398_v28 = vmul.f32 %v2847_v62, %v3647_v59  ;;  %v1327_v9 = vadd.f32 %v1279_v35, %v1153_v11  ;;  %v3649_v40 = vrot.slane %v2574_v2, 4  ;;  %v3188_v37 = vadd.f32 %v1791_v43, %v1665_v15 }
 0x1cb   :  { %v1572_v52 = vmul.f32 %v2847_v62, %v3648_v42  ;;  %v798_v33 = vadd.f32 %v750_v23, %v624_v19  ;;  %v1272_v45 = vrot.slane %v1224_v29, 4  ;;  %v3650_v26 = vrot.slane %v2411_v54, 4 }
 0x1cc   :  { %v3186_v7 = vmul.f32 %v2847_v62, %v3649_v40  ;;  %v1446_v39 = vrot.slane %v1398_v28, 5  ;;  %v1501_v4 = vadd.f32 %v1453_v16, %v1327_v9  ;;  %v3651_v24 = vrot.slane %v2401_v49, 5 }
 0x1cd   :  { %v1620_v58 = vrot.slane %v1572_v52, 6  ;;  %v712_v56 = vmul.f32 %v2849_v41, %v3650_v26  ;;  %v972_v17 = vadd.f32 %v924_v44, %v798_v33  ;;  %v3652_v19 = vrot.slane %v2405_v51, 3 }
 0x1ce   :  { %v634_v35 = vmul.f32 %v2849_v41, %v3651_v24  ;;  %v3653_v40 = vrot.slane %v2413_v55, 2  ;;  %v3654_v11 = vrot.slane %v2436_v10, 1  ;;  %v3207_v16 = vmul.f32 %v2849_v41, %v2492_v20 }
 0x1cf   :  { %v886_v29 = vmul.f32 %v2849_v41, %v3652_v19  ;;  %v760_v62 = vrot.slane %v712_v56, 1  ;;  %v1675_v59 = vadd.f32 %v1627_v3, %v1501_v4  ;;  %v1146_v28 = vadd.f32 %v1098_v60, %v972_v17 }
 0x1d0   :  { %v1060_v43 = vmul.f32 %v2849_v41, %v3653_v40  ;;  %v1234_v23 = vmul.f32 %v2849_v41, %v3654_v11  ;;  %v3655_v44 = vrot.slane %v2548_v63, 7  ;;  %v1456_v19 = vrot.slane %v3207_v16, 5  ;;  %v3718_v16 = vld [vmem:[#allocation29_spill] sm:$0xff] }
 0x1d1   :  { %v808_v52 = vadd.f32 %v760_v62, %v634_v35  ;;  %v934_v9 = vrot.slane %v886_v29, 2  ;;  %v3215_v56 = vadd.f32 %v1801_v5, %v1675_v59  ;;  %v1320_v24 = vadd.f32 %v1272_v45, %v1146_v28 }
 0x1d2   :  { %v3213_v42 = vmul.f32 %v2849_v41, %v3655_v44  ;;  %v1108_v33 = vrot.slane %v1060_v43, 3  ;;  %v1282_v26 = vrot.slane %v1234_v23, 4  ;;  %v3656_v60 = vrot.slane %v2397_v47, 1 }
 0x1d3   :  { %v982_v3 = vadd.f32 %v934_v9, %v808_v52  ;;  %v875_v17 = vmul.f32 %v2403_v50, %v2861_v14  ;;  %v3657_v35 = vrot.slane %v2409_v53, 7  ;;  %v1494_v62 = vadd.f32 %v1446_v39, %v1320_v24 }
 0x1d4   :  { %v1630_v40 = vrot.slane %v3213_v42, 6  ;;  %v701_v4 = vmul.f32 %v3656_v60, %v2861_v14  ;;  %v3658_v45 = vrot.slane %v2399_v48, 2  ;;  %v3659_v43 = vrot.slane %v2417_v57, 6 }
 0x1d5   :  { %v1049_v29 = vmul.f32 %v3657_v35, %v2861_v14  ;;  %v3660_v47 = vrot.slane %v2464_v36, 5  ;;  %v1156_v50 = vadd.f32 %v1108_v33, %v982_v3  ;;  %v923_v44 = vrot.slane %v875_v17, 2 }
 0x1d6   :  { %v623_v5 = vmul.f32 %v3658_v45, %v2861_v14  ;;  %v1223_v11 = vmul.f32 %v3659_v43, %v2861_v14  ;;  %v749_v28 = vrot.slane %v701_v4, 1  ;;  %v3237_v53 = vadd.f32 %v1620_v58, %v1494_v62 }
 0x1d7   :  { %v1397_v23 = vmul.f32 %v3660_v47, %v2861_v14  ;;  %v1097_v39 = vrot.slane %v1049_v29, 3  ;;  %v3661_v48 = vrot.slane %v2520_v30, 4  ;;  %v3242_v24 = vadd.f32 %v1282_v26, %v1156_v50 }
 0x1d8   :  { %v1271_v52 = vrot.slane %v1223_v11, 4  ;;  %v797_v57 = vadd.f32 %v749_v28, %v623_v5  ;;  %v3662_v35 = vrot.slane %v2574_v2, 3  ;;  %v3663_v33 = vrot.slane %v2401_v49, 4 }
 0x1d9   :  { %v1571_v9 = vmul.f32 %v3661_v48, %v2861_v14  ;;  %v1445_v60 = vrot.slane %v1397_v23, 5  ;;  %v3664_v58 = vrot.slane %v2411_v54, 3  ;;  %v3665_v17 = vrot.slane %v2405_v51, 2 }
 0x1da   :  { %v1745_v45 = vmul.f32 %v3662_v35, %v2861_v14  ;;  %v633_v3 = vmul.f32 %v3663_v33, %v2863_v21  ;;  %v3666_v26 = vrot.slane %v2413_v55, 1  ;;  %v971_v5 = vadd.f32 %v923_v44, %v797_v57 }
 0x1db   :  { %v711_v4 = vmul.f32 %v3664_v58, %v2863_v21  ;;  %v885_v29 = vmul.f32 %v3665_v17, %v2863_v21  ;;  %v1619_v43 = vrot.slane %v1571_v9, 6  ;;  %v1233_v14 = vmul.f32 %v2436_v10, %v2863_v21 }
 0x1dc   :  { %v1059_v62 = vmul.f32 %v3666_v26, %v2863_v21  ;;  %v3667_v11 = vrot.slane %v2492_v20, 7  ;;  %v1793_v23 = vrot.slane %v1745_v45, 7  ;;  %v3668_v48 = vrot.slane %v2548_v63, 6 }
 0x1dd   :  { %v759_v50 = vrot.slane %v711_v4, 1  ;;  %v933_v28 = vrot.slane %v885_v29, 2  ;;  %v1145_v33 = vadd.f32 %v1097_v39, %v971_v5  ;;  %v1281_v17 = vrot.slane %v1233_v14, 4 }
 0x1de   :  { %v1407_v47 = vmul.f32 %v3667_v11, %v2863_v21  ;;  %v3267_v35 = vmul.f32 %v3668_v48, %v2863_v21  ;;  %v1107_v58 = vrot.slane %v1059_v62, 3  ;;  %v3669_v44 = vrot.slane %v2592_v8, 5 }
 0x1df   :  { %v807_v57 = vadd.f32 %v759_v50, %v633_v3  ;;  %v3670_v45 = vrot.slane %v2411_v54, 6  ;;  %v1319_v29 = vadd.f32 %v1271_v52, %v1145_v33  ;;  %v3671_v39 = vrot.slane %v2401_v49, 7 }
 0x1e0   :  { %v3272_v9 = vmul.f32 %v3669_v44, %v2863_v21  ;;  %v1455_v26 = vrot.slane %v1407_v47, 5  ;;  %v1629_v11 = vrot.slane %v3267_v35, 6  ;;  %v3672_v5 = vrot.slane %v2405_v51, 5 }
 0x1e1   :  { %v714_v4 = vmul.f32 %v2902_v38, %v3670_v45  ;;  %v636_v62 = vmul.f32 %v2902_v38, %v3671_v39  ;;  %v981_v14 = vadd.f32 %v933_v28, %v807_v57  ;;  %v3673_v47 = vrot.slane %v2413_v55, 4 }
 0x1e2   :  { %v888_v21 = vmul.f32 %v2902_v38, %v3672_v5  ;;  %v3674_v44 = vrot.slane %v2436_v10, 3  ;;  %v1493_v33 = vadd.f32 %v1445_v60, %v1319_v29  ;;  %v3675_v59 = vrot.slane %v2401_v49, 6 }
 0x1e3   :  { %v762_v3 = vrot.slane %v714_v4, 1  ;;  %v1062_v50 = vmul.f32 %v2902_v38, %v3673_v47  ;;  %v3676_v48 = vrot.slane %v2411_v54, 5  ;;  %v1155_v28 = vadd.f32 %v1107_v58, %v981_v14 }
 0x1e4   :  { %v1236_v52 = vmul.f32 %v2902_v38, %v3674_v44  ;;  %v936_v45 = vrot.slane %v888_v21, 2  ;;  %v635_v39 = vmul.f32 %v3675_v59, %v2909_v18  ;;  %v3677_v4 = vrot.slane %v2405_v51, 4 }
 0x1e5   :  { %v713_v5 = vmul.f32 %v3676_v48, %v2909_v18  ;;  %v810_v57 = vadd.f32 %v762_v3, %v636_v62  ;;  %v3678_v15 = vrot.slane %v2413_v55, 3  ;;  %v1667_v60 = vadd.f32 %v1619_v43, %v1493_v33 }
 0x1e6   :  { %v887_v47 = vmul.f32 %v3677_v4, %v2909_v18  ;;  %v3679_v49 = vrot.slane %v2436_v10, 2  ;;  %v3680_v54 = vrot.slane %v2492_v20, 1  ;;  %v1329_v58 = vadd.f32 %v1281_v17, %v1155_v28 }
 0x1e7   :  { %v1061_v44 = vmul.f32 %v3678_v15, %v2909_v18  ;;  %v761_v29 = vrot.slane %v713_v5, 1  ;;  %v1110_v62 = vrot.slane %v1062_v50, 3  ;;  %v3311_v51 = vmul.f32 %v2548_v63, %v2909_v18 }
 0x1e8   :  { %v1235_v59 = vmul.f32 %v3679_v49, %v2909_v18  ;;  %v1409_v48 = vmul.f32 %v3680_v54, %v2909_v18  ;;  %v935_v21 = vrot.slane %v887_v47, 2  ;;  %v3313_v14 = vadd.f32 %v1793_v23, %v1667_v60 }
 0x1e9   :  { %v809_v55 = vadd.f32 %v761_v29, %v635_v39  ;;  %v1109_v15 = vrot.slane %v1061_v44, 3  ;;  %v1503_v3 = vadd.f32 %v1455_v26, %v1329_v58  ;;  %v1631_v10 = vrot.slane %v3311_v51, 6  ;;  %v3689_v58 = vld [vmem:[#allocation33_spill] sm:$0xff]  ;;  %v3691_v51 = vld [vmem:[#allocation8_spill] sm:$0xff] }
 0x1ea   :  { %v1283_v43 = vrot.slane %v1235_v59, 4  ;;  %v1457_v33 = vrot.slane %v1409_v48, 5  ;;  %v3681_v5 = vrot.slane %v2965_v6, 2  ;;  %v3682_v50 = vrot.slane %v2592_v8, 7  ;;  %v3686_v48 = vld [vmem:[#allocation37_spill] sm:$0xff] }
 0x1eb   :  { %v983_v17 = vadd.f32 %v935_v21, %v809_v55  ;;  %v3683_v23 = vrot.slane %v2837_v32, 2  ;;  %v984_v47 = vadd.f32 %v936_v45, %v810_v57  ;;  %v1902_v26 = vrot.slane %v3313_v14, 6  ;;  %v3688_v57 = vld [vmem:[#allocation36_spill] sm:$0xff] }
 0x1ec   :  { %v968_v4 = vadd.f32 %v3681_v5, %v2981_v22  ;;  %v3322_v28 = vmul.f32 %v3682_v50, %v2909_v18  ;;  %v3684_v44 = vrot.slane %v2971_v31, 3  ;;  %v1268_v29 = vrot.slane %v2977_v61, 4  ;;  %v3693_v61 = vld [vmem:[#allocation19_spill] sm:$0xff] }
 0x1ed   :  { %v976_v39 = vadd.f32 %v3683_v23, %v2883_v12  ;;  %v1276_v6 = vrot.slane %v2857_v13, 4  ;;  %v1157_v22 = vadd.f32 %v1109_v15, %v983_v17  ;;  %v3685_v49 = vrot.slane %v2845_v34, 3 }
 0x1ee   :  { %v1142_v60 = vadd.f32 %v3684_v44, %v968_v4  ;;  %v1158_v18 = vadd.f32 %v1110_v62, %v984_v47  ;;  %v1284_v54 = vrot.slane %v1236_v52, 4  ;;  %v3687_v32 = vrot.slane %v3686_v48, 4  ;;  %v3695_v52 = vld [vmem:[#allocation13_spill] sm:$0xff]  ;;  %v3698_v47 = vld [vmem:[#allocation26_spill] sm:$0xff] }
 0x1ef   :  { %v1150_v59 = vadd.f32 %v3685_v49, %v976_v39  ;;  %v3690_v21 = vrot.slane %v3689_v58, 4  ;;  %v3692_v55 = vrot.slane %v3691_v51, 2  ;;  %v1331_v13 = vadd.f32 %v1283_v43, %v1157_v22  ;;  %v3697_v39 = vld [vmem:[#allocation31_spill] sm:$0xff]  ;;  %v3700_v43 = vld [vmem:[#allocation38_spill] sm:$0xff]  ;;  %v3708_v51 = vld [vmem:[#allocation9_spill] sm:$0xff] }
 0x1f0   :  { %v1315_v12 = vadd.f32 %v3687_v32, %v3053_v27  ;;  %v1316_v45 = vadd.f32 %v1268_v29, %v1142_v60  ;;  %v1805_v15 = vrot.slane %v3322_v28, 7  ;;  %v3694_v62 = vrot.slane %v2464_v36, 2 }
 0x1f1   :  { %v1323_v31 = vadd.f32 %v3690_v21, %v3688_v57  ;;  %v1394_v5 = vmul.f32 %v3693_v61, %v3692_v55  ;;  %v1324_v34 = vadd.f32 %v1276_v6, %v1150_v59  ;;  %v1332_v17 = vadd.f32 %v1284_v54, %v1158_v18  ;;  %v3702_v6 = vld [vmem:[#allocation23_spill] sm:$0xff]  ;;  %v3703_v59 = vld [vmem:[#allocation17_spill] sm:$0xff]  ;;  %v3705_v54 = vld [vmem:[#allocation34_spill] sm:$0xff] }
 0x1f2   :  { %v1402_v4 = vmul.f32 %v3695_v52, %v3694_v62  ;;  %v3696_v27 = vrot.slane %v2492_v20, 2  ;;  %v3699_v44 = vrot.slane %v3698_v47, 5  ;;  %v1505_v29 = vadd.f32 %v1457_v33, %v1331_v13  ;;  %v3707_v21 = vld [vmem:[#allocation20_spill] sm:$0xff]  ;;  %v3710_v13 = vld [vmem:[#allocation14_spill] sm:$0xff] }
 0x1f3   :  { %v1442_v23 = vrot.slane %v1394_v5, 5  ;;  %v3701_v22 = vrot.slane %v3700_v43, 5  ;;  %v3704_v36 = vrot.slane %v3703_v59, 5  ;;  %v3706_v20 = vrot.slane %v3705_v54, 5  ;;  %v3714_v43 = vld [vmem:[#allocation30_spill] sm:$0xff]  ;;  %v3716_v59 = vld [vmem:[#allocation27_spill] sm:$0xff] }
 0x1f4   :  { %v1410_v50 = vmul.f32 %v2902_v38, %v3696_v27  ;;  %v1488_v60 = vadd.f32 %v3699_v44, %v3697_v39  ;;  %v1450_v49 = vrot.slane %v1402_v4, 5  ;;  %v1567_v55 = vmul.f32 %v3708_v51, %v3707_v21 }
 0x1f5   :  { %v1489_v48 = vadd.f32 %v3701_v22, %v1315_v12  ;;  %v1496_v32 = vadd.f32 %v3704_v36, %v3702_v6  ;;  %v1490_v18 = vadd.f32 %v1442_v23, %v1316_v45  ;;  %v1497_v58 = vadd.f32 %v3706_v20, %v1323_v31 }
 0x1f6   :  { %v1458_v57 = vrot.slane %v1410_v50, 5  ;;  %v1498_v5 = vadd.f32 %v1450_v49, %v1324_v34  ;;  %v3709_v62 = vrot.slane %v3708_v51, 1  ;;  %v1575_v12 = vmul.f32 %v2520_v30, %v3710_v13  ;;  %v3713_v49 = vld [vmem:[#allocation35_spill] sm:$0xff] }
 0x1f7   :  { %v3711_v4 = vrot.slane %v2520_v30, 1  ;;  %v1504_v45 = vadd.f32 %v1456_v19, %v3242_v24  ;;  %v3712_v50 = vrot.slane %v2548_v63, 1  ;;  %v1615_v23 = vrot.slane %v1567_v55, 6  ;;  %v3719_v19 = vld [vmem:[#allocation24_spill] sm:$0xff] }
 0x1f8   :  { %v1568_v33 = vmul.f32 %v3693_v61, %v3709_v62  ;;  %v1506_v31 = vadd.f32 %v1458_v57, %v1332_v17  ;;  %v1623_v47 = vrot.slane %v1575_v12, 6  ;;  %v3715_v22 = vrot.slane %v3714_v43, 6  ;;  %v3721_v57 = vld [vmem:[#allocation18_spill] sm:$0xff] }
 0x1f9   :  { %v1576_v27 = vmul.f32 %v3695_v52, %v3711_v4  ;;  %v1584_v34 = vmul.f32 %v2902_v38, %v3712_v50  ;;  %v3717_v36 = vrot.slane %v3716_v59, 6  ;;  %v1663_v20 = vadd.f32 %v1615_v23, %v1489_v48  ;;  %v3723_v50 = vld [vmem:[#allocation10_spill] sm:$0xff]  ;;  %v3725_v48 = vld [vmem:[#allocation12_spill] sm:$0xff] }
 0x1fa   :  { %v1616_v39 = vrot.slane %v1568_v33, 6  ;;  %v1661_v6 = vadd.f32 %v3715_v22, %v3713_v49  ;;  %v3720_v24 = vrot.slane %v3719_v19, 6  ;;  %v3722_v51 = vrot.slane %v3721_v57, 6 }
 0x1fb   :  { %v1624_v44 = vrot.slane %v1576_v27, 6  ;;  %v1632_v30 = vrot.slane %v1584_v34, 6  ;;  %v1662_v54 = vadd.f32 %v3717_v36, %v1488_v60  ;;  %v1671_v62 = vadd.f32 %v1623_v47, %v1497_v58 }
 0x1fc   :  { %v1669_v17 = vadd.f32 %v3720_v24, %v3718_v16  ;;  %v1664_v63 = vadd.f32 %v1616_v39, %v1490_v18  ;;  %v1670_v55 = vadd.f32 %v3722_v51, %v1496_v32  ;;  %v1677_v12 = vadd.f32 %v1629_v11, %v1503_v3  ;;  %v3737_v24 = vld [vmem:[#allocation25_spill] sm:$0xff] }
 0x1fd   :  { %v1672_v33 = vadd.f32 %v1624_v44, %v1498_v5  ;;  %v1678_v4 = vadd.f32 %v1630_v40, %v1504_v45  ;;  %v1679_v27 = vadd.f32 %v1631_v10, %v1505_v29  ;;  %v3724_v60 = vrot.slane %v3723_v50, 6  ;;  %v3728_v5 = vld [vmem:[#allocation11_spill] sm:$0xff] }
 0x1fe   :  { %v3726_v23 = vrot.slane %v3723_v50, 7  ;;  %v1742_v32 = vmul.f32 %v3693_v61, %v3723_v50  ;;  %v3727_v58 = vrot.slane %v2574_v2, 6  ;;  %v3729_v42 = vrot.slane %v2574_v2, 7 }
 0x1ff   :  { %v1740_v34 = vmul.f32 %v3725_v48, %v3724_v60  ;;  %v1680_v11 = vadd.f32 %v1632_v30, %v1506_v31  ;;  %v1750_v3 = vmul.f32 %v3695_v52, %v2574_v2  ;;  %v3730_v10 = vrot.slane %v2592_v8, 6  ;;  %v3732_v31 = vld [vmem:[#allocation15_spill] sm:$0xff]  ;;  %v3734_v2 = vld [vmem:[#allocation32_spill] sm:$0xff] }
 0x200   :  { %v1741_v18 = vmul.f32 %v3726_v23, %v3707_v21  ;;  %v1748_v35 = vmul.f32 %v3728_v5, %v3727_v58  ;;  %v1749_v40 = vmul.f32 %v3729_v42, %v3710_v13  ;;  %v1758_v21 = vmul.f32 %v2902_v38, %v2592_v8  ;;  %v3731_v13 = vld [vmem:[#allocation22_spill] sm:$0xff] }
 0x201   :  { %v1756_v29 = vmul.f32 %v2849_v41, %v3730_v10  ;;  %v1788_v61 = vrot.slane %v1740_v34, 7  ;;  %v1790_v39 = vrot.slane %v1742_v32, 7  ;;  %v1798_v49 = vrot.slane %v1750_v3, 7 }
 0x202   :  { %v1789_v45 = vrot.slane %v1741_v18, 7  ;;  %v1796_v47 = vrot.slane %v1748_v35, 7  ;;  %v1797_v44 = vrot.slane %v1749_v40, 7  ;;  %v1806_v22 = vrot.slane %v1758_v21, 7 }
 0x203   :  { %v1804_v43 = vrot.slane %v1756_v29, 7  ;;  %v3733_v30 = vrot.slane %v3732_v31, 7  ;;  %v3735_v52 = vrot.slane %v3734_v2, 7  ;;  %v1836_v16 = vadd.f32 %v1788_v61, %v1662_v54 }
 0x204   :  { %v1837_v41 = vadd.f32 %v1789_v45, %v1663_v20  ;;  %v1838_v19 = vadd.f32 %v1790_v39, %v1664_v63  ;;  %v3736_v8 = vrot.slane %v3186_v7, 7  ;;  %v3738_v57 = vrot.slane %v3737_v24, 7  ;;  %v3741_v7 = vld [vmem:[#allocation21_spill] sm:$0xff] }
 0x205   :  { %v1834_v59 = vadd.f32 %v3733_v30, %v3731_v13  ;;  %v1835_v36 = vadd.f32 %v3735_v52, %v1661_v6  ;;  %v1844_v50 = vadd.f32 %v1796_v47, %v1670_v55  ;;  %v1845_v60 = vadd.f32 %v1797_v44, %v1671_v62 }
 0x206   :  { %v1842_v38 = vadd.f32 %v3736_v8, %v3237_v53  ;;  %v1843_v51 = vadd.f32 %v3738_v57, %v1669_v17  ;;  %v1846_v48 = vadd.f32 %v1798_v49, %v1672_v33  ;;  %v3739_v34 = vrot.slane %v3109_v46, 7  ;;  %v3742_v53 = vld [vmem:[#allocation16_spill] sm:$0xff] }
 0x207   :  { %v3740_v18 = vrot.slane %v3272_v9, 7  ;;  %v1852_v54 = vadd.f32 %v1804_v43, %v1678_v4  ;;  %v1853_v20 = vadd.f32 %v1805_v15, %v1679_v27  ;;  %vm1880_vm0 = vcmask 1041409   ;;  %v3744_v46 = vld [vmem:[#allocation28_spill] sm:$0xff] }
 0x208   :  { %v1850_v23 = vadd.f32 %v3739_v34, %v3152_v0  ;;  %vm1883_vm10 = vcmask 1042434   ;;  %v3743_v63 = vrot.slane %v3742_v53, 7  ;;  %v1885_v55 = vrot.slane %v1834_v59, 5 }
 0x209   :  { %v1851_v6 = vadd.f32 %v3740_v18, %v1677_v12  ;;  %vm1886_vm11 = vcmask 1043459   ;;  %v1888_v62 = vrot.slane %v1835_v36, 4  ;;  %v1854_v33 = vadd.f32 %v1806_v22, %v1680_v11 }
 0x20a   :  { %v1881_v17 = vsel %vm1880_vm0, %v3743_v63, %v3741_v7  ;;  %v3745_v0 = vrot.slane %v3744_v46, 6  ;;  %vm1889_vm12 = vcmask 1044484   ;;  %vm1892_vm13 = vcmask 1045509  }
 0x20b   :  { %v1891_v15 = vrot.slane %v1836_v16, 3  ;;  %v1894_v12 = vrot.slane %v1837_v41, 2  ;;  %vm1895_vm14 = vcmask 1046534   ;;  %vm1898_vm15 = vcmask 1047559  }
 0x20c   :  { %v1884_v9 = vsel %vm1883_vm10, %v3745_v0, %v1881_v17  ;;  %v3746_v27 = vrot.slane %v3135_v25, 7  ;;  %v1904_v58 = vrot.slane %v1842_v38, 5  ;;  %v1897_v35 = vrot.slane %v1838_v19, 1 }
 0x20d   :  { %v1887_v28 = vsel %vm1886_vm11, %v1885_v55, %v1884_v9  ;;  %v1906_v40 = vrot.slane %v1843_v51, 4  ;;  %v1908_v10 = vrot.slane %v1844_v50, 3  ;;  %v1910_v29 = vrot.slane %v1845_v60, 2 }
 0x20e   :  { %v1890_v4 = vsel %vm1889_vm12, %v1888_v62, %v1887_v28  ;;  %v1901_v32 = vsel %vm1880_vm0, %v3746_v27, %v3188_v37  ;;  %v3747_v37 = vld [vmem:[#allocation39_spill] sm:$0xff]  ;;  %v1918_v39 = vrot.slane %v1850_v23, 5  ;;  %v3749_v47 = vrot.slane %v3215_v56, 6 }
 0x20f   :  { %v1893_v5 = vsel %vm1892_vm13, %v1891_v15, %v1890_v4  ;;  %v1903_v42 = vsel %vm1883_vm10, %v1902_v26, %v1901_v32  ;;  %v3748_v61 = vrot.slane %v3747_v37, 7  ;;  %v1912_v26 = vrot.slane %v1846_v48, 1 }
 0x210   :  { %v1896_v11 = vsel %vm1895_vm14, %v1894_v12, %v1893_v5  ;;  %v1905_v3 = vsel %vm1886_vm11, %v1904_v58, %v1903_v42  ;;  %v1920_v49 = vrot.slane %v1851_v6, 4  ;;  %v1922_v13 = vrot.slane %v1852_v54, 3 }
 0x211   :  { %v1899_v21 = vsel %vm1898_vm15, %v1897_v35, %v1896_v11  ;;  %v1907_v25 = vsel %vm1889_vm12, %v1906_v40, %v1905_v3  ;;  %v1915_v45 = vsel %vm1880_vm0, %v3748_v61, %v3104_v1  ;;  %v1924_v31 = vrot.slane %v1853_v20, 2 }
 0x212   :  { %v1909_v14 = vsel %vm1892_vm13, %v1908_v10, %v1907_v25  ;;  %v1917_v44 = vsel %vm1883_vm10, %v3749_v47, %v1915_v45  ;;  %1931 = vst [vmem:[#allocation4] sm:$0xff] %v1899_v21  ;;  %v1926_v2 = vrot.slane %v1854_v33, 1 }
 0x213   :  { %v1911_v43 = vsel %vm1895_vm14, %v1910_v29, %v1909_v14  ;;  %v1919_v22 = vsel %vm1886_vm11, %v1918_v39, %v1917_v44 }
 0x214   :  { %v1913_v1 = vsel %vm1898_vm15, %v1912_v26, %v1911_v43  ;;  %v1921_v30 = vsel %vm1889_vm12, %v1920_v49, %v1919_v22 }
 0x215   :  { %v1923_v59 = vsel %vm1892_vm13, %v1922_v13, %v1921_v30  ;;  %1932 = vst [vmem:[#allocation4 + $0x8] sm:$0xff] %v1913_v1 }
 0x216   :  { %v1925_v56 = vsel %vm1895_vm14, %v1924_v31, %v1923_v59 }
 0x217   :  { %v1927_v52 = vsel %vm1898_vm15, %v1926_v2, %v1925_v56 }
 0x218   :  { %1933 = vst [vmem:[#allocation4 + $0x10] sm:$0xff] %v1927_v52 }
 0x219   :  { %2184 = shalt.err (!%p2181_p12)
}
 0x21a   :  { %s2185_s6 = scalar_lea.hbm %s3483_s4, 384 }
 0x21b   :  { %p2186_p13 = scmp.ne.s32.totalorder %s3483_s4, %s2185_s6  ;;  %p2189_p0 = scmp.lt.u32.totalorder %s2185_s6, %s3483_s4 }
 0x21d   :  { %p2191_p1 = pnand %p2189_p0, %p2186_p13 }
 0x21f   :  { %2194 = shalt.err (!%p2191_p1)
}
 0x220   :  { %1957 = dma.vmem_to_hbm [thread:$0]  %s1952_s28, 384, %s3483_s4, [#allocation5], %s2209_s24, %s2209_s24, %s2210_s25  }
 0x221   :  { %2195 = dma.done.wait [#allocation3], 3072  }
 0x222   :  { %2196 = vsyncadd [#allocation3], 4294964224 }
 0x223   :  { %2197 = dma.done.wait [#allocation5], 384  }
 0x224   :  { %2198 = vsyncadd [#allocation5], 4294966912 }
 0x225   :  { %1964 = vsyncpa [#allocation3], 1 }
 0x226   :  { %1965 = vsyncpa [#allocation5], 1 }

</bundles_post_ra>
